<compile_context>
chip_gen: v7x
topology: tpu7x:2x2x1
jax: 0.10.0
libtpu: 0.0.40
codegen_flags: <defaults>
</compile_context>

<pallas_src>
import functools

import jax
import jax.numpy as jnp
from jax.experimental import pallas as pl
from jax.experimental.pallas import tpu as pltpu

BN_EPS = 1e-5


# ----------------------------------------------------------------------------
# Pallas kernels: fused (W @ X  ->  * scale + bias  [+ residual]  [-> relu])
# Operands are (Cout, K) x (K, TN); output (Cout, TN) is lane-dense in TN.
# ----------------------------------------------------------------------------
def _mm_bn_kernel(x_ref, w_ref, scale_ref, bias_ref, o_ref, *, relu):
    acc = jnp.dot(w_ref[...], x_ref[...], preferred_element_type=jnp.float32)
    y = acc * scale_ref[...] + bias_ref[...]
    if relu:
        y = jnp.maximum(y, 0.0)
    o_ref[...] = y.astype(o_ref.dtype)


def _mm_bn_res_kernel(x_ref, w_ref, scale_ref, bias_ref, r_ref, o_ref, *, relu):
    acc = jnp.dot(w_ref[...], x_ref[...], preferred_element_type=jnp.float32)
    y = acc * scale_ref[...] + bias_ref[...] + r_ref[...]
    if relu:
        y = jnp.maximum(y, 0.0)
    o_ref[...] = y.astype(o_ref.dtype)


def _root_kernel(*refs, relu, chs):
    # refs = (w_ref, scale_ref, bias_ref, x_ref_0, ..., x_ref_{n-1}, o_ref)
    w_ref, scale_ref, bias_ref = refs[0], refs[1], refs[2]
    x_refs = refs[3:-1]
    o_ref = refs[-1]
    w = w_ref[...]
    acc = None
    off = 0
    for xr, c in zip(x_refs, chs):
        part = jnp.dot(w[:, off:off + c], xr[...],
                       preferred_element_type=jnp.float32)
        acc = part if acc is None else acc + part
        off += c
    y = acc * scale_ref[...] + bias_ref[...]
    if relu:
        y = jnp.maximum(y, 0.0)
    o_ref[...] = y.astype(o_ref.dtype)


# ----------------------------------------------------------------------------
# Tiling helper
# ----------------------------------------------------------------------------
def _pick_tn(mp, k, cout):
    """Largest lane tile that divides mp, fits a VMEM budget and (when
    possible) leaves >= 2 grid steps (v7x has 2 TensorCores per chip)."""
    budget = 12 << 20  # conservative: fits v7x's 32 MiB scoped-VMEM default
    cands = []
    for tn in (2048, 1024, 512, 256, 128):
        if mp % tn:
            continue
        est = 2 * k * tn * 2 + 4 * cout * tn * 4 + 2 * k * cout * 2
        if est <= budget:
            cands.append(tn)
    for tn in cands:
        if mp // tn >= 2:
            return tn
    return cands[0] if cands else 128


def _cost(cout, k, mp, extra_bytes=0):
    flops = 2 * cout * k * mp
    bytes_accessed = k * mp * 2 + cout * k * 2 + cout * mp * 4 + extra_bytes
    return pl.CostEstimate(flops=flops, transcendentals=0,
                           bytes_accessed=bytes_accessed)


# ----------------------------------------------------------------------------
# Transposed fused matmul: out(Cout, M) = W(Cout, K) @ X(K, M)  (+ BN epilogue)
# ----------------------------------------------------------------------------
def _matmul_bn_act_T(x2dT, w2dT, scale, bias, res2dT, relu):
    k, m = x2dT.shape
    cout = w2dT.shape[0]
    mp = pl.cdiv(m, 128) * 128
    if mp != m:  # CIFAR shapes are 128-multiples; this path is rarely taken.
        x2dT = jnp.pad(x2dT, ((0, 0), (0, mp - m)))
        if res2dT is not None:
            res2dT = jnp.pad(res2dT, ((0, 0), (0, mp - m)))
    tn = _pick_tn(mp, k, cout)

    in_specs = [
        pl.BlockSpec((k, tn), lambda i: (0, i)),
        pl.BlockSpec((cout, k), lambda i: (0, 0)),
        pl.BlockSpec((cout, 1), lambda i: (0, 0)),
        pl.BlockSpec((cout, 1), lambda i: (0, 0)),
    ]
    args = [x2dT, w2dT, scale, bias]
    extra_bytes = 0
    if res2dT is not None:
        in_specs.append(pl.BlockSpec((cout, tn), lambda i: (0, i)))
        args.append(res2dT)
        extra_bytes = cout * mp * 4
        kernel = functools.partial(_mm_bn_res_kernel, relu=relu)
    else:
        kernel = functools.partial(_mm_bn_kernel, relu=relu)

    out = pl.pallas_call(
        kernel,
        out_shape=jax.ShapeDtypeStruct((cout, mp), jnp.float32),
        grid=(mp // tn,),
        in_specs=in_specs,
        out_specs=pl.BlockSpec((cout, tn), lambda i: (0, i)),
        compiler_params=pltpu.CompilerParams(dimension_semantics=("parallel",)),
        cost_estimate=_cost(cout, k, mp, extra_bytes),
    )(*args)
    return out[:, :m] if mp != m else out


# ----------------------------------------------------------------------------
# Conv + BN (+ residual) (+ ReLU): activations in (C, N, H, W) layout
# ----------------------------------------------------------------------------
def conv_bn_act(x, w, bn, stride=1, relu=True, residual=None):
    """x: (Cin, N, H, W) f32. w: PyTorch layout (Cout, Cin, kh, kw).
    bn: (gamma, beta, mean, var). residual: (Cout, N, Ho, Wo) f32."""
    gamma, beta, mean, var = bn
    cout, cin, kh, kw = w.shape
    pad = (kh - 1) // 2
    _, n, h, wdim = x.shape
    ho = (h + 2 * pad - kh) // stride + 1
    wo = (wdim + 2 * pad - kw) // stride + 1
    m = n * ho * wo

    xb = x.astype(jnp.bfloat16)  # bf16 patch matrix: halves HBM traffic, MXU-native
    if kh == 1 and kw == 1:
        x2dT = xb[:, :, ::stride, ::stride].reshape(cin, m)
    else:
        xp = jnp.pad(xb, ((0, 0), (0, 0), (pad, pad), (pad, pad)))
        taps = []
        for i in range(kh):
            for j in range(kw):
                taps.append(
                    xp[:, :, i:i + stride * ho:stride,
                       j:j + stride * wo:stride].reshape(cin, m))
        x2dT = jnp.concatenate(taps, axis=0)  # (K, M), K ordered (kh, kw, cin)

    k = kh * kw * cin
    # Match the (kh, kw, cin) ordering of the patch rows.
    w2dT = jnp.transpose(w, (0, 2, 3, 1)).reshape(cout, k).astype(jnp.bfloat16)
    inv_std = gamma / jnp.sqrt(var + BN_EPS)
    scale = inv_std.reshape(cout, 1)
    bias = (beta - mean * inv_std).reshape(cout, 1)
    res2dT = residual.reshape(cout, m) if residual is not None else None

    outT = _matmul_bn_act_T(x2dT, w2dT, scale, bias, res2dT, relu)
    return outT.reshape(cout, n, ho, wo)


# ----------------------------------------------------------------------------
# Root: 1x1 conv over channel-concat, without materializing the concat
# ----------------------------------------------------------------------------
def root_fwd(p, xs):
    gamma, beta, mean, var = p["bn"]
    w = p["conv"]                      # (Cout, Ktot, 1, 1)
    cout, ktot = w.shape[0], w.shape[1]
    n, h, wdim = xs[0].shape[1], xs[0].shape[2], xs[0].shape[3]
    m = n * h * wdim
    chs = tuple(int(t.shape[0]) for t in xs)

    x2dTs = [t.astype(jnp.bfloat16).reshape(t.shape[0], m) for t in xs]
    w2dT = w.reshape(cout, ktot).astype(jnp.bfloat16)
    inv_std = gamma / jnp.sqrt(var + BN_EPS)
    scale = inv_std.reshape(cout, 1)
    bias = (beta - mean * inv_std).reshape(cout, 1)

    mp = pl.cdiv(m, 128) * 128
    if mp != m:
        x2dTs = [jnp.pad(t, ((0, 0), (0, mp - m))) for t in x2dTs]
    tn = _pick_tn(mp, ktot, cout)

    in_specs = [
        pl.BlockSpec((cout, ktot), lambda i: (0, 0)),
        pl.BlockSpec((cout, 1), lambda i: (0, 0)),
        pl.BlockSpec((cout, 1), lambda i: (0, 0)),
    ] + [pl.BlockSpec((c, tn), lambda i: (0, i)) for c in chs]

    out = pl.pallas_call(
        functools.partial(_root_kernel, relu=True, chs=chs),
        out_shape=jax.ShapeDtypeStruct((cout, mp), jnp.float32),
        grid=(mp // tn,),
        in_specs=in_specs,
        out_specs=pl.BlockSpec((cout, tn), lambda i: (0, i)),
        compiler_params=pltpu.CompilerParams(dimension_semantics=("parallel",)),
        cost_estimate=_cost(cout, ktot, mp),
    )(w2dT, scale, bias, *x2dTs)
    out = out[:, :m] if mp != m else out
    return out.reshape(cout, n, h, wdim)


# ----------------------------------------------------------------------------
# Deterministic parameter initialization
# ----------------------------------------------------------------------------
def init_conv(key, cout, cin, k):
    fan_in = cin * k * k
    return jax.random.normal(key, (cout, cin, k, k), jnp.float32) * (2.0 / fan_in) ** 0.5


def init_bn(key, c):
    k1, k2, k3 = jax.random.split(key, 3)
    gamma = 1.0 + 0.1 * jax.random.normal(k1, (c,), jnp.float32)
    beta = 0.1 * jax.random.normal(k2, (c,), jnp.float32)
    mean = 0.1 * jax.random.normal(k3, (c,), jnp.float32)
    var = jnp.ones((c,), jnp.float32)
    return (gamma, beta, mean, var)


def init_basic_block(key, cin, cout, stride):
    keys = jax.random.split(key, 6)
    p = {
        "stride": stride,
        "conv1": init_conv(keys[0], cout, cin, 3),
        "bn1": init_bn(keys[1], cout),
        "conv2": init_conv(keys[2], cout, cout, 3),
        "bn2": init_bn(keys[3], cout),
    }
    if stride != 1 or cin != cout:
        p["sc_conv"] = init_conv(keys[4], cout, cin, 1)
        p["sc_bn"] = init_bn(keys[5], cout)
    return p


def init_root(key, cin, cout):
    k1, k2 = jax.random.split(key)
    return {"conv": init_conv(k1, cout, cin, 1), "bn": init_bn(k2, cout)}


def init_tree(key, cin, cout, level=1, stride=1):
    p = {"level": level}
    keys = jax.random.split(key, level + 4)
    if level == 1:
        p["root"] = init_root(keys[0], 2 * cout, cout)
        p["left_node"] = init_basic_block(keys[1], cin, cout, stride)
        p["right_node"] = init_basic_block(keys[2], cout, cout, 1)
    else:
        p["root"] = init_root(keys[0], (level + 2) * cout, cout)
        for i in reversed(range(1, level)):
            p["level_%d" % i] = init_tree(keys[i], cin, cout, level=i, stride=stride)
        p["prev_root"] = init_basic_block(keys[level], cin, cout, stride)
        p["left_node"] = init_basic_block(keys[level + 1], cout, cout, 1)
        p["right_node"] = init_basic_block(keys[level + 2], cout, cout, 1)
    return p


# ----------------------------------------------------------------------------
# Forward passes (mirror the PyTorch module structure)
# ----------------------------------------------------------------------------
def basic_block_fwd(p, x):
    out = conv_bn_act(x, p["conv1"], p["bn1"], stride=p["stride"], relu=True)
    if "sc_conv" in p:
        sc = conv_bn_act(x, p["sc_conv"], p["sc_bn"], stride=p["stride"], relu=False)
    else:
        sc = x
    # residual add + final relu fused into the second conv's Pallas epilogue
    out = conv_bn_act(out, p["conv2"], p["bn2"], stride=1, relu=True, residual=sc)
    return out


def tree_fwd(p, x):
    level = p["level"]
    xs = [basic_block_fwd(p["prev_root"], x)] if level > 1 else []
    for i in reversed(range(1, level)):
        x = tree_fwd(p["level_%d" % i], x)
        xs.append(x)
    x = basic_block_fwd(p["left_node"], x)
    xs.append(x)
    x = basic_block_fwd(p["right_node"], x)
    xs.append(x)
    return root_fwd(p["root"], xs)


# ----------------------------------------------------------------------------
if __name__ == "__main__":
    key = jax.random.PRNGKey(0)
    kx, kp = jax.random.split(key)

    N, Cin, H, W = 2, 4, 16, 16
    Cout = 8
    level = 2
    stride = 1

    x_nchw = jax.random.normal(kx, (N, Cin, H, W), jnp.float32)
    params = init_tree(kp, Cin, Cout, level=level, stride=stride)

    @jax.jit
    def forward(x):
        xc = jnp.transpose(x, (1, 0, 2, 3))      # NCHW -> (C, N, H, W)
        yc = tree_fwd(params, xc)
        return jnp.transpose(yc, (1, 0, 2, 3))   # -> NCHW

    out_nchw = forward(x_nchw)
    jax.block_until_ready(out_nchw)
    assert out_nchw.shape == (N, Cout, H, W), out_nchw.shape
    assert bool(jnp.all(jnp.isfinite(out_nchw)))
    print("KERNEL_OK")
</pallas_src>

<mosaic_0001>
module attributes {stable_mosaic.version = 11 : i64} {
  func.func @_mm_bn_kernel(%arg0: i32, %arg1: memref<36x256xbf16, #tpu.memory_space<vmem>>, %arg2: memref<8x36xbf16, #tpu.memory_space<vmem>>, %arg3: memref<8x1xf32, #tpu.memory_space<vmem>>, %arg4: memref<8x1xf32, #tpu.memory_space<vmem>>, %arg5: memref<8x256xf32, #tpu.memory_space<vmem>>) attributes {dimension_semantics = [#tpu.dimension_semantics<parallel>], iteration_bounds = array<i64: 2>, scalar_prefetch = 0 : i64, scratch_operands = 0 : i64, tpu.core_type = #tpu.core_type<tc>, window_params = [{transform_indices = @transform_0, window_bounds = array<i64: 36, 256>}, {pipeline_mode = #tpu.pipeline_mode<synchronous>, transform_indices = @transform_1, window_bounds = array<i64: 8, 36>}, {pipeline_mode = #tpu.pipeline_mode<synchronous>, transform_indices = @transform_2, window_bounds = array<i64: 8, 1>}, {pipeline_mode = #tpu.pipeline_mode<synchronous>, transform_indices = @transform_3, window_bounds = array<i64: 8, 1>}, {transform_indices = @transform_4, window_bounds = array<i64: 8, 256>}]} {
    %c0 = arith.constant 0 : index
    %c0_0 = arith.constant 0 : index
    %0 = vector.load %arg2[%c0, %c0_0] : memref<8x36xbf16, #tpu.memory_space<vmem>>, vector<8x36xbf16>
    %c0_1 = arith.constant 0 : index
    %c0_2 = arith.constant 0 : index
    %1 = vector.load %arg1[%c0_1, %c0_2] : memref<36x256xbf16, #tpu.memory_space<vmem>>, vector<36x256xbf16>
    %cst = arith.constant dense<0.000000e+00> : vector<8x256xf32>
    %2 = tpu.matmul %0, %1, %cst {dimension_numbers = #tpu.dot_dimension_numbers<[1], [0], [0], [1], [0, 0, 1, 1], [], []>} : vector<8x36xbf16>, vector<36x256xbf16>, vector<8x256xf32> -> vector<8x256xf32>
    %c0_3 = arith.constant 0 : index
    %c0_4 = arith.constant 0 : index
    %3 = vector.load %arg3[%c0_3, %c0_4] : memref<8x1xf32, #tpu.memory_space<vmem>>, vector<8x1xf32>
    %4 = vector.broadcast %3 : vector<8x1xf32> to vector<8x256xf32>
    %5 = arith.mulf %2, %4 : vector<8x256xf32>
    %c0_5 = arith.constant 0 : index
    %c0_6 = arith.constant 0 : index
    %6 = vector.load %arg4[%c0_5, %c0_6] : memref<8x1xf32, #tpu.memory_space<vmem>>, vector<8x1xf32>
    %7 = vector.broadcast %6 : vector<8x1xf32> to vector<8x256xf32>
    %8 = arith.addf %5, %7 : vector<8x256xf32>
    %cst_7 = arith.constant 0.000000e+00 : f32
    %9 = vector.broadcast %cst_7 : f32 to vector<8x256xf32>
    %10 = arith.maximumf %8, %9 : vector<8x256xf32>
    %c0_8 = arith.constant 0 : index
    %c0_9 = arith.constant 0 : index
    %11 = vector.load %arg5[%c0_8, %c0_9] : memref<8x256xf32, #tpu.memory_space<vmem>>, vector<8x256xf32>
    tpu.vector_store %arg5[%c0_8, %c0_9], %10 {strides = array<i32>} : memref<8x256xf32, #tpu.memory_space<vmem>>, vector<8x256xf32>,
    return
  }
  func.func @transform_0(%arg0: i32) -> (i32, i32) {
    %c0_i32 = arith.constant 0 : i32
    %c0_i32_0 = arith.constant 0 : i32
    return %c0_i32, %arg0 : i32, i32
  }
  func.func @transform_1(%arg0: i32) -> (i32, i32) {
    %c0_i32 = arith.constant 0 : i32
    %c0_i32_0 = arith.constant 0 : i32
    %c0_i32_1 = arith.constant 0 : i32
    return %c0_i32, %c0_i32_0 : i32, i32
  }
  func.func @transform_2(%arg0: i32) -> (i32, i32) {
    %c0_i32 = arith.constant 0 : i32
    %c0_i32_0 = arith.constant 0 : i32
    %c0_i32_1 = arith.constant 0 : i32
    return %c0_i32, %c0_i32_0 : i32, i32
  }
  func.func @transform_3(%arg0: i32) -> (i32, i32) {
    %c0_i32 = arith.constant 0 : i32
    %c0_i32_0 = arith.constant 0 : i32
    %c0_i32_1 = arith.constant 0 : i32
    return %c0_i32, %c0_i32_0 : i32, i32
  }
  func.func @transform_4(%arg0: i32) -> (i32, i32) {
    %c0_i32 = arith.constant 0 : i32
    %c0_i32_0 = arith.constant 0 : i32
    return %c0_i32, %arg0 : i32, i32
  }
}

module attributes {stable_mosaic.version = 11 : i64} {
  func.func @_mm_bn_res_kernel(%arg0: i32, %arg1: memref<72x256xbf16, #tpu.memory_space<vmem>>, %arg2: memref<8x72xbf16, #tpu.memory_space<vmem>>, %arg3: memref<8x1xf32, #tpu.memory_space<vmem>>, %arg4: memref<8x1xf32, #tpu.memory_space<vmem>>, %arg5: memref<8x256xf32, #tpu.memory_space<vmem>>, %arg6: memref<8x256xf32, #tpu.memory_space<vmem>>) attributes {dimension_semantics = [#tpu.dimension_semantics<parallel>], iteration_bounds = array<i64: 2>, scalar_prefetch = 0 : i64, scratch_operands = 0 : i64, tpu.core_type = #tpu.core_type<tc>, window_params = [{transform_indices = @transform_0, window_bounds = array<i64: 72, 256>}, {pipeline_mode = #tpu.pipeline_mode<synchronous>, transform_indices = @transform_1, window_bounds = array<i64: 8, 72>}, {pipeline_mode = #tpu.pipeline_mode<synchronous>, transform_indices = @transform_2, window_bounds = array<i64: 8, 1>}, {pipeline_mode = #tpu.pipeline_mode<synchronous>, transform_indices = @transform_3, window_bounds = array<i64: 8, 1>}, {transform_indices = @transform_4, window_bounds = array<i64: 8, 256>}, {transform_indices = @transform_5, window_bounds = array<i64: 8, 256>}]} {
    %c0 = arith.constant 0 : index
    %c0_0 = arith.constant 0 : index
    %0 = vector.load %arg2[%c0, %c0_0] : memref<8x72xbf16, #tpu.memory_space<vmem>>, vector<8x72xbf16>
    %c0_1 = arith.constant 0 : index
    %c0_2 = arith.constant 0 : index
    %1 = vector.load %arg1[%c0_1, %c0_2] : memref<72x256xbf16, #tpu.memory_space<vmem>>, vector<72x256xbf16>
    %cst = arith.constant dense<0.000000e+00> : vector<8x256xf32>
    %2 = tpu.matmul %0, %1, %cst {dimension_numbers = #tpu.dot_dimension_numbers<[1], [0], [0], [1], [0, 0, 1, 1], [], []>} : vector<8x72xbf16>, vector<72x256xbf16>, vector<8x256xf32> -> vector<8x256xf32>
    %c0_3 = arith.constant 0 : index
    %c0_4 = arith.constant 0 : index
    %3 = vector.load %arg3[%c0_3, %c0_4] : memref<8x1xf32, #tpu.memory_space<vmem>>, vector<8x1xf32>
    %4 = vector.broadcast %3 : vector<8x1xf32> to vector<8x256xf32>
    %5 = arith.mulf %2, %4 : vector<8x256xf32>
    %c0_5 = arith.constant 0 : index
    %c0_6 = arith.constant 0 : index
    %6 = vector.load %arg4[%c0_5, %c0_6] : memref<8x1xf32, #tpu.memory_space<vmem>>, vector<8x1xf32>
    %7 = vector.broadcast %6 : vector<8x1xf32> to vector<8x256xf32>
    %8 = arith.addf %5, %7 : vector<8x256xf32>
    %c0_7 = arith.constant 0 : index
    %c0_8 = arith.constant 0 : index
    %9 = vector.load %arg5[%c0_7, %c0_8] : memref<8x256xf32, #tpu.memory_space<vmem>>, vector<8x256xf32>
    %10 = arith.addf %8, %9 : vector<8x256xf32>
    %cst_9 = arith.constant 0.000000e+00 : f32
    %11 = vector.broadcast %cst_9 : f32 to vector<8x256xf32>
    %12 = arith.maximumf %10, %11 : vector<8x256xf32>
    %c0_10 = arith.constant 0 : index
    %c0_11 = arith.constant 0 : index
    %13 = vector.load %arg6[%c0_10, %c0_11] : memref<8x256xf32, #tpu.memory_space<vmem>>, vector<8x256xf32>
    tpu.vector_store %arg6[%c0_10, %c0_11], %12 {strides = array<i32>} : memref<8x256xf32, #tpu.memory_space<vmem>>, vector<8x256xf32>,
    return
  }
  func.func @transform_0(%arg0: i32) -> (i32, i32) {
    %c0_i32 = arith.constant 0 : i32
    %c0_i32_0 = arith.constant 0 : i32
    return %c0_i32, %arg0 : i32, i32
  }
  func.func @transform_1(%arg0: i32) -> (i32, i32) {
    %c0_i32 = arith.constant 0 : i32
    %c0_i32_0 = arith.constant 0 : i32
    %c0_i32_1 = arith.constant 0 : i32
    return %c0_i32, %c0_i32_0 : i32, i32
  }
  func.func @transform_2(%arg0: i32) -> (i32, i32) {
    %c0_i32 = arith.constant 0 : i32
    %c0_i32_0 = arith.constant 0 : i32
    %c0_i32_1 = arith.constant 0 : i32
    return %c0_i32, %c0_i32_0 : i32, i32
  }
  func.func @transform_3(%arg0: i32) -> (i32, i32) {
    %c0_i32 = arith.constant 0 : i32
    %c0_i32_0 = arith.constant 0 : i32
    %c0_i32_1 = arith.constant 0 : i32
    return %c0_i32, %c0_i32_0 : i32, i32
  }
  func.func @transform_4(%arg0: i32) -> (i32, i32) {
    %c0_i32 = arith.constant 0 : i32
    %c0_i32_0 = arith.constant 0 : i32
    return %c0_i32, %arg0 : i32, i32
  }
  func.func @transform_5(%arg0: i32) -> (i32, i32) {
    %c0_i32 = arith.constant 0 : i32
    %c0_i32_0 = arith.constant 0 : i32
    return %c0_i32, %arg0 : i32, i32
  }
}

module attributes {stable_mosaic.version = 11 : i64} {
  func.func @_mm_bn_kernel(%arg0: i32, %arg1: memref<4x256xbf16, #tpu.memory_space<vmem>>, %arg2: memref<8x4xbf16, #tpu.memory_space<vmem>>, %arg3: memref<8x1xf32, #tpu.memory_space<vmem>>, %arg4: memref<8x1xf32, #tpu.memory_space<vmem>>, %arg5: memref<8x256xf32, #tpu.memory_space<vmem>>) attributes {dimension_semantics = [#tpu.dimension_semantics<parallel>], iteration_bounds = array<i64: 2>, scalar_prefetch = 0 : i64, scratch_operands = 0 : i64, tpu.core_type = #tpu.core_type<tc>, window_params = [{transform_indices = @transform_0, window_bounds = array<i64: 4, 256>}, {pipeline_mode = #tpu.pipeline_mode<synchronous>, transform_indices = @transform_1, window_bounds = array<i64: 8, 4>}, {pipeline_mode = #tpu.pipeline_mode<synchronous>, transform_indices = @transform_2, window_bounds = array<i64: 8, 1>}, {pipeline_mode = #tpu.pipeline_mode<synchronous>, transform_indices = @transform_3, window_bounds = array<i64: 8, 1>}, {transform_indices = @transform_4, window_bounds = array<i64: 8, 256>}]} {
    %c0 = arith.constant 0 : index
    %c0_0 = arith.constant 0 : index
    %0 = vector.load %arg2[%c0, %c0_0] : memref<8x4xbf16, #tpu.memory_space<vmem>>, vector<8x4xbf16>
    %c0_1 = arith.constant 0 : index
    %c0_2 = arith.constant 0 : index
    %1 = vector.load %arg1[%c0_1, %c0_2] : memref<4x256xbf16, #tpu.memory_space<vmem>>, vector<4x256xbf16>
    %cst = arith.constant dense<0.000000e+00> : vector<8x256xf32>
    %2 = tpu.matmul %0, %1, %cst {dimension_numbers = #tpu.dot_dimension_numbers<[1], [0], [0], [1], [0, 0, 1, 1], [], []>} : vector<8x4xbf16>, vector<4x256xbf16>, vector<8x256xf32> -> vector<8x256xf32>
    %c0_3 = arith.constant 0 : index
    %c0_4 = arith.constant 0 : index
    %3 = vector.load %arg3[%c0_3, %c0_4] : memref<8x1xf32, #tpu.memory_space<vmem>>, vector<8x1xf32>
    %4 = vector.broadcast %3 : vector<8x1xf32> to vector<8x256xf32>
    %5 = arith.mulf %2, %4 : vector<8x256xf32>
    %c0_5 = arith.constant 0 : index
    %c0_6 = arith.constant 0 : index
    %6 = vector.load %arg4[%c0_5, %c0_6] : memref<8x1xf32, #tpu.memory_space<vmem>>, vector<8x1xf32>
    %7 = vector.broadcast %6 : vector<8x1xf32> to vector<8x256xf32>
    %8 = arith.addf %5, %7 : vector<8x256xf32>
    %c0_7 = arith.constant 0 : index
    %c0_8 = arith.constant 0 : index
    %9 = vector.load %arg5[%c0_7, %c0_8] : memref<8x256xf32, #tpu.memory_space<vmem>>, vector<8x256xf32>
    tpu.vector_store %arg5[%c0_7, %c0_8], %8 {strides = array<i32>} : memref<8x256xf32, #tpu.memory_space<vmem>>, vector<8x256xf32>,
    return
  }
  func.func @transform_0(%arg0: i32) -> (i32, i32) {
    %c0_i32 = arith.constant 0 : i32
    %c0_i32_0 = arith.constant 0 : i32
    return %c0_i32, %arg0 : i32, i32
  }
  func.func @transform_1(%arg0: i32) -> (i32, i32) {
    %c0_i32 = arith.constant 0 : i32
    %c0_i32_0 = arith.constant 0 : i32
    %c0_i32_1 = arith.constant 0 : i32
    return %c0_i32, %c0_i32_0 : i32, i32
  }
  func.func @transform_2(%arg0: i32) -> (i32, i32) {
    %c0_i32 = arith.constant 0 : i32
    %c0_i32_0 = arith.constant 0 : i32
    %c0_i32_1 = arith.constant 0 : i32
    return %c0_i32, %c0_i32_0 : i32, i32
  }
  func.func @transform_3(%arg0: i32) -> (i32, i32) {
    %c0_i32 = arith.constant 0 : i32
    %c0_i32_0 = arith.constant 0 : i32
    %c0_i32_1 = arith.constant 0 : i32
    return %c0_i32, %c0_i32_0 : i32, i32
  }
  func.func @transform_4(%arg0: i32) -> (i32, i32) {
    %c0_i32 = arith.constant 0 : i32
    %c0_i32_0 = arith.constant 0 : i32
    return %c0_i32, %arg0 : i32, i32
  }
}

module attributes {stable_mosaic.version = 11 : i64} {
  func.func @_mm_bn_kernel(%arg0: i32, %arg1: memref<72x256xbf16, #tpu.memory_space<vmem>>, %arg2: memref<8x72xbf16, #tpu.memory_space<vmem>>, %arg3: memref<8x1xf32, #tpu.memory_space<vmem>>, %arg4: memref<8x1xf32, #tpu.memory_space<vmem>>, %arg5: memref<8x256xf32, #tpu.memory_space<vmem>>) attributes {dimension_semantics = [#tpu.dimension_semantics<parallel>], iteration_bounds = array<i64: 2>, scalar_prefetch = 0 : i64, scratch_operands = 0 : i64, tpu.core_type = #tpu.core_type<tc>, window_params = [{transform_indices = @transform_0, window_bounds = array<i64: 72, 256>}, {pipeline_mode = #tpu.pipeline_mode<synchronous>, transform_indices = @transform_1, window_bounds = array<i64: 8, 72>}, {pipeline_mode = #tpu.pipeline_mode<synchronous>, transform_indices = @transform_2, window_bounds = array<i64: 8, 1>}, {pipeline_mode = #tpu.pipeline_mode<synchronous>, transform_indices = @transform_3, window_bounds = array<i64: 8, 1>}, {transform_indices = @transform_4, window_bounds = array<i64: 8, 256>}]} {
    %c0 = arith.constant 0 : index
    %c0_0 = arith.constant 0 : index
    %0 = vector.load %arg2[%c0, %c0_0] : memref<8x72xbf16, #tpu.memory_space<vmem>>, vector<8x72xbf16>
    %c0_1 = arith.constant 0 : index
    %c0_2 = arith.constant 0 : index
    %1 = vector.load %arg1[%c0_1, %c0_2] : memref<72x256xbf16, #tpu.memory_space<vmem>>, vector<72x256xbf16>
    %cst = arith.constant dense<0.000000e+00> : vector<8x256xf32>
    %2 = tpu.matmul %0, %1, %cst {dimension_numbers = #tpu.dot_dimension_numbers<[1], [0], [0], [1], [0, 0, 1, 1], [], []>} : vector<8x72xbf16>, vector<72x256xbf16>, vector<8x256xf32> -> vector<8x256xf32>
    %c0_3 = arith.constant 0 : index
    %c0_4 = arith.constant 0 : index
    %3 = vector.load %arg3[%c0_3, %c0_4] : memref<8x1xf32, #tpu.memory_space<vmem>>, vector<8x1xf32>
    %4 = vector.broadcast %3 : vector<8x1xf32> to vector<8x256xf32>
    %5 = arith.mulf %2, %4 : vector<8x256xf32>
    %c0_5 = arith.constant 0 : index
    %c0_6 = arith.constant 0 : index
    %6 = vector.load %arg4[%c0_5, %c0_6] : memref<8x1xf32, #tpu.memory_space<vmem>>, vector<8x1xf32>
    %7 = vector.broadcast %6 : vector<8x1xf32> to vector<8x256xf32>
    %8 = arith.addf %5, %7 : vector<8x256xf32>
    %cst_7 = arith.constant 0.000000e+00 : f32
    %9 = vector.broadcast %cst_7 : f32 to vector<8x256xf32>
    %10 = arith.maximumf %8, %9 : vector<8x256xf32>
    %c0_8 = arith.constant 0 : index
    %c0_9 = arith.constant 0 : index
    %11 = vector.load %arg5[%c0_8, %c0_9] : memref<8x256xf32, #tpu.memory_space<vmem>>, vector<8x256xf32>
    tpu.vector_store %arg5[%c0_8, %c0_9], %10 {strides = array<i32>} : memref<8x256xf32, #tpu.memory_space<vmem>>, vector<8x256xf32>,
    return
  }
  func.func @transform_0(%arg0: i32) -> (i32, i32) {
    %c0_i32 = arith.constant 0 : i32
    %c0_i32_0 = arith.constant 0 : i32
    return %c0_i32, %arg0 : i32, i32
  }
  func.func @transform_1(%arg0: i32) -> (i32, i32) {
    %c0_i32 = arith.constant 0 : i32
    %c0_i32_0 = arith.constant 0 : i32
    %c0_i32_1 = arith.constant 0 : i32
    return %c0_i32, %c0_i32_0 : i32, i32
  }
  func.func @transform_2(%arg0: i32) -> (i32, i32) {
    %c0_i32 = arith.constant 0 : i32
    %c0_i32_0 = arith.constant 0 : i32
    %c0_i32_1 = arith.constant 0 : i32
    return %c0_i32, %c0_i32_0 : i32, i32
  }
  func.func @transform_3(%arg0: i32) -> (i32, i32) {
    %c0_i32 = arith.constant 0 : i32
    %c0_i32_0 = arith.constant 0 : i32
    %c0_i32_1 = arith.constant 0 : i32
    return %c0_i32, %c0_i32_0 : i32, i32
  }
  func.func @transform_4(%arg0: i32) -> (i32, i32) {
    %c0_i32 = arith.constant 0 : i32
    %c0_i32_0 = arith.constant 0 : i32
    return %c0_i32, %arg0 : i32, i32
  }
}

module attributes {stable_mosaic.version = 11 : i64} {
  func.func @_root_kernel(%arg0: i32, %arg1: memref<8x32xbf16, #tpu.memory_space<vmem>>, %arg2: memref<8x1xf32, #tpu.memory_space<vmem>>, %arg3: memref<8x1xf32, #tpu.memory_space<vmem>>, %arg4: memref<8x256xbf16, #tpu.memory_space<vmem>>, %arg5: memref<8x256xbf16, #tpu.memory_space<vmem>>, %arg6: memref<8x256xbf16, #tpu.memory_space<vmem>>, %arg7: memref<8x256xbf16, #tpu.memory_space<vmem>>, %arg8: memref<8x256xf32, #tpu.memory_space<vmem>>) attributes {dimension_semantics = [#tpu.dimension_semantics<parallel>], iteration_bounds = array<i64: 2>, scalar_prefetch = 0 : i64, scratch_operands = 0 : i64, tpu.core_type = #tpu.core_type<tc>, window_params = [{pipeline_mode = #tpu.pipeline_mode<synchronous>, transform_indices = @transform_0, window_bounds = array<i64: 8, 32>}, {pipeline_mode = #tpu.pipeline_mode<synchronous>, transform_indices = @transform_1, window_bounds = array<i64: 8, 1>}, {pipeline_mode = #tpu.pipeline_mode<synchronous>, transform_indices = @transform_2, window_bounds = array<i64: 8, 1>}, {transform_indices = @transform_3, window_bounds = array<i64: 8, 256>}, {transform_indices = @transform_4, window_bounds = array<i64: 8, 256>}, {transform_indices = @transform_5, window_bounds = array<i64: 8, 256>}, {transform_indices = @transform_6, window_bounds = array<i64: 8, 256>}, {transform_indices = @transform_7, window_bounds = array<i64: 8, 256>}]} {
    %c0 = arith.constant 0 : index
    %c0_0 = arith.constant 0 : index
    %0 = vector.load %arg1[%c0, %c0_0] : memref<8x32xbf16, #tpu.memory_space<vmem>>, vector<8x32xbf16>
    %1 = vector.extract_strided_slice %0 {offsets = [0, 0], sizes = [8, 8], strides = [1, 1]} : vector<8x32xbf16> to vector<8x8xbf16>
    %c0_1 = arith.constant 0 : index
    %c0_2 = arith.constant 0 : index
    %2 = vector.load %arg4[%c0_1, %c0_2] : memref<8x256xbf16, #tpu.memory_space<vmem>>, vector<8x256xbf16>
    %cst = arith.constant dense<0.000000e+00> : vector<8x256xf32>
    %3 = tpu.matmul %1, %2, %cst {dimension_numbers = #tpu.dot_dimension_numbers<[1], [0], [0], [1], [0, 0, 1, 1], [], []>} : vector<8x8xbf16>, vector<8x256xbf16>, vector<8x256xf32> -> vector<8x256xf32>
    %4 = vector.extract_strided_slice %0 {offsets = [0, 8], sizes = [8, 8], strides = [1, 1]} : vector<8x32xbf16> to vector<8x8xbf16>
    %c0_3 = arith.constant 0 : index
    %c0_4 = arith.constant 0 : index
    %5 = vector.load %arg5[%c0_3, %c0_4] : memref<8x256xbf16, #tpu.memory_space<vmem>>, vector<8x256xbf16>
    %cst_5 = arith.constant dense<0.000000e+00> : vector<8x256xf32>
    %6 = tpu.matmul %4, %5, %cst_5 {dimension_numbers = #tpu.dot_dimension_numbers<[1], [0], [0], [1], [0, 0, 1, 1], [], []>} : vector<8x8xbf16>, vector<8x256xbf16>, vector<8x256xf32> -> vector<8x256xf32>
    %7 = arith.addf %3, %6 : vector<8x256xf32>
    %8 = vector.extract_strided_slice %0 {offsets = [0, 16], sizes = [8, 8], strides = [1, 1]} : vector<8x32xbf16> to vector<8x8xbf16>
    %c0_6 = arith.constant 0 : index
    %c0_7 = arith.constant 0 : index
    %9 = vector.load %arg6[%c0_6, %c0_7] : memref<8x256xbf16, #tpu.memory_space<vmem>>, vector<8x256xbf16>
    %cst_8 = arith.constant dense<0.000000e+00> : vector<8x256xf32>
    %10 = tpu.matmul %8, %9, %cst_8 {dimension_numbers = #tpu.dot_dimension_numbers<[1], [0], [0], [1], [0, 0, 1, 1], [], []>} : vector<8x8xbf16>, vector<8x256xbf16>, vector<8x256xf32> -> vector<8x256xf32>
    %11 = arith.addf %7, %10 : vector<8x256xf32>
    %12 = vector.extract_strided_slice %0 {offsets = [0, 24], sizes = [8, 8], strides = [1, 1]} : vector<8x32xbf16> to vector<8x8xbf16>
    %c0_9 = arith.constant 0 : index
    %c0_10 = arith.constant 0 : index
    %13 = vector.load %arg7[%c0_9, %c0_10] : memref<8x256xbf16, #tpu.memory_space<vmem>>, vector<8x256xbf16>
    %cst_11 = arith.constant dense<0.000000e+00> : vector<8x256xf32>
    %14 = tpu.matmul %12, %13, %cst_11 {dimension_numbers = #tpu.dot_dimension_numbers<[1], [0], [0], [1], [0, 0, 1, 1], [], []>} : vector<8x8xbf16>, vector<8x256xbf16>, vector<8x256xf32> -> vector<8x256xf32>
    %15 = arith.addf %11, %14 : vector<8x256xf32>
    %c0_12 = arith.constant 0 : index
    %c0_13 = arith.constant 0 : index
    %16 = vector.load %arg2[%c0_12, %c0_13] : memref<8x1xf32, #tpu.memory_space<vmem>>, vector<8x1xf32>
    %17 = vector.broadcast %16 : vector<8x1xf32> to vector<8x256xf32>
    %18 = arith.mulf %15, %17 : vector<8x256xf32>
    %c0_14 = arith.constant 0 : index
    %c0_15 = arith.constant 0 : index
    %19 = vector.load %arg3[%c0_14, %c0_15] : memref<8x1xf32, #tpu.memory_space<vmem>>, vector<8x1xf32>
    %20 = vector.broadcast %19 : vector<8x1xf32> to vector<8x256xf32>
    %21 = arith.addf %18, %20 : vector<8x256xf32>
    %cst_16 = arith.constant 0.000000e+00 : f32
    %22 = vector.broadcast %cst_16 : f32 to vector<8x256xf32>
    %23 = arith.maximumf %21, %22 : vector<8x256xf32>
    %c0_17 = arith.constant 0 : index
    %c0_18 = arith.constant 0 : index
    %24 = vector.load %arg8[%c0_17, %c0_18] : memref<8x256xf32, #tpu.memory_space<vmem>>, vector<8x256xf32>
    tpu.vector_store %arg8[%c0_17, %c0_18], %23 {strides = array<i32>} : memref<8x256xf32, #tpu.memory_space<vmem>>, vector<8x256xf32>,
    return
  }
  func.func @transform_0(%arg0: i32) -> (i32, i32) {
    %c0_i32 = arith.constant 0 : i32
    %c0_i32_0 = arith.constant 0 : i32
    %c0_i32_1 = arith.constant 0 : i32
    return %c0_i32, %c0_i32_0 : i32, i32
  }
  func.func @transform_1(%arg0: i32) -> (i32, i32) {
    %c0_i32 = arith.constant 0 : i32
    %c0_i32_0 = arith.constant 0 : i32
    %c0_i32_1 = arith.constant 0 : i32
    return %c0_i32, %c0_i32_0 : i32, i32
  }
  func.func @transform_2(%arg0: i32) -> (i32, i32) {
    %c0_i32 = arith.constant 0 : i32
    %c0_i32_0 = arith.constant 0 : i32
    %c0_i32_1 = arith.constant 0 : i32
    return %c0_i32, %c0_i32_0 : i32, i32
  }
  func.func @transform_3(%arg0: i32) -> (i32, i32) {
    %c0_i32 = arith.constant 0 : i32
    %c0_i32_0 = arith.constant 0 : i32
    return %c0_i32, %arg0 : i32, i32
  }
  func.func @transform_4(%arg0: i32) -> (i32, i32) {
    %c0_i32 = arith.constant 0 : i32
    %c0_i32_0 = arith.constant 0 : i32
    return %c0_i32, %arg0 : i32, i32
  }
  func.func @transform_5(%arg0: i32) -> (i32, i32) {
    %c0_i32 = arith.constant 0 : i32
    %c0_i32_0 = arith.constant 0 : i32
    return %c0_i32, %arg0 : i32, i32
  }
  func.func @transform_6(%arg0: i32) -> (i32, i32) {
    %c0_i32 = arith.constant 0 : i32
    %c0_i32_0 = arith.constant 0 : i32
    return %c0_i32, %arg0 : i32, i32
  }
  func.func @transform_7(%arg0: i32) -> (i32, i32) {
    %c0_i32 = arith.constant 0 : i32
    %c0_i32_0 = arith.constant 0 : i32
    return %c0_i32, %arg0 : i32, i32
  }
}

module attributes {stable_mosaic.version = 11 : i64} {
  func.func @_root_kernel(%arg0: i32, %arg1: memref<8x16xbf16, #tpu.memory_space<vmem>>, %arg2: memref<8x1xf32, #tpu.memory_space<vmem>>, %arg3: memref<8x1xf32, #tpu.memory_space<vmem>>, %arg4: memref<8x256xbf16, #tpu.memory_space<vmem>>, %arg5: memref<8x256xbf16, #tpu.memory_space<vmem>>, %arg6: memref<8x256xf32, #tpu.memory_space<vmem>>) attributes {dimension_semantics = [#tpu.dimension_semantics<parallel>], iteration_bounds = array<i64: 2>, scalar_prefetch = 0 : i64, scratch_operands = 0 : i64, tpu.core_type = #tpu.core_type<tc>, window_params = [{pipeline_mode = #tpu.pipeline_mode<synchronous>, transform_indices = @transform_0, window_bounds = array<i64: 8, 16>}, {pipeline_mode = #tpu.pipeline_mode<synchronous>, transform_indices = @transform_1, window_bounds = array<i64: 8, 1>}, {pipeline_mode = #tpu.pipeline_mode<synchronous>, transform_indices = @transform_2, window_bounds = array<i64: 8, 1>}, {transform_indices = @transform_3, window_bounds = array<i64: 8, 256>}, {transform_indices = @transform_4, window_bounds = array<i64: 8, 256>}, {transform_indices = @transform_5, window_bounds = array<i64: 8, 256>}]} {
    %c0 = arith.constant 0 : index
    %c0_0 = arith.constant 0 : index
    %0 = vector.load %arg1[%c0, %c0_0] : memref<8x16xbf16, #tpu.memory_space<vmem>>, vector<8x16xbf16>
    %1 = vector.extract_strided_slice %0 {offsets = [0, 0], sizes = [8, 8], strides = [1, 1]} : vector<8x16xbf16> to vector<8x8xbf16>
    %c0_1 = arith.constant 0 : index
    %c0_2 = arith.constant 0 : index
    %2 = vector.load %arg4[%c0_1, %c0_2] : memref<8x256xbf16, #tpu.memory_space<vmem>>, vector<8x256xbf16>
    %cst = arith.constant dense<0.000000e+00> : vector<8x256xf32>
    %3 = tpu.matmul %1, %2, %cst {dimension_numbers = #tpu.dot_dimension_numbers<[1], [0], [0], [1], [0, 0, 1, 1], [], []>} : vector<8x8xbf16>, vector<8x256xbf16>, vector<8x256xf32> -> vector<8x256xf32>
    %4 = vector.extract_strided_slice %0 {offsets = [0, 8], sizes = [8, 8], strides = [1, 1]} : vector<8x16xbf16> to vector<8x8xbf16>
    %c0_3 = arith.constant 0 : index
    %c0_4 = arith.constant 0 : index
    %5 = vector.load %arg5[%c0_3, %c0_4] : memref<8x256xbf16, #tpu.memory_space<vmem>>, vector<8x256xbf16>
    %cst_5 = arith.constant dense<0.000000e+00> : vector<8x256xf32>
    %6 = tpu.matmul %4, %5, %cst_5 {dimension_numbers = #tpu.dot_dimension_numbers<[1], [0], [0], [1], [0, 0, 1, 1], [], []>} : vector<8x8xbf16>, vector<8x256xbf16>, vector<8x256xf32> -> vector<8x256xf32>
    %7 = arith.addf %3, %6 : vector<8x256xf32>
    %c0_6 = arith.constant 0 : index
    %c0_7 = arith.constant 0 : index
    %8 = vector.load %arg2[%c0_6, %c0_7] : memref<8x1xf32, #tpu.memory_space<vmem>>, vector<8x1xf32>
    %9 = vector.broadcast %8 : vector<8x1xf32> to vector<8x256xf32>
    %10 = arith.mulf %7, %9 : vector<8x256xf32>
    %c0_8 = arith.constant 0 : index
    %c0_9 = arith.constant 0 : index
    %11 = vector.load %arg3[%c0_8, %c0_9] : memref<8x1xf32, #tpu.memory_space<vmem>>, vector<8x1xf32>
    %12 = vector.broadcast %11 : vector<8x1xf32> to vector<8x256xf32>
    %13 = arith.addf %10, %12 : vector<8x256xf32>
    %cst_10 = arith.constant 0.000000e+00 : f32
    %14 = vector.broadcast %cst_10 : f32 to vector<8x256xf32>
    %15 = arith.maximumf %13, %14 : vector<8x256xf32>
    %c0_11 = arith.constant 0 : index
    %c0_12 = arith.constant 0 : index
    %16 = vector.load %arg6[%c0_11, %c0_12] : memref<8x256xf32, #tpu.memory_space<vmem>>, vector<8x256xf32>
    tpu.vector_store %arg6[%c0_11, %c0_12], %15 {strides = array<i32>} : memref<8x256xf32, #tpu.memory_space<vmem>>, vector<8x256xf32>,
    return
  }
  func.func @transform_0(%arg0: i32) -> (i32, i32) {
    %c0_i32 = arith.constant 0 : i32
    %c0_i32_0 = arith.constant 0 : i32
    %c0_i32_1 = arith.constant 0 : i32
    return %c0_i32, %c0_i32_0 : i32, i32
  }
  func.func @transform_1(%arg0: i32) -> (i32, i32) {
    %c0_i32 = arith.constant 0 : i32
    %c0_i32_0 = arith.constant 0 : i32
    %c0_i32_1 = arith.constant 0 : i32
    return %c0_i32, %c0_i32_0 : i32, i32
  }
  func.func @transform_2(%arg0: i32) -> (i32, i32) {
    %c0_i32 = arith.constant 0 : i32
    %c0_i32_0 = arith.constant 0 : i32
    %c0_i32_1 = arith.constant 0 : i32
    return %c0_i32, %c0_i32_0 : i32, i32
  }
  func.func @transform_3(%arg0: i32) -> (i32, i32) {
    %c0_i32 = arith.constant 0 : i32
    %c0_i32_0 = arith.constant 0 : i32
    return %c0_i32, %arg0 : i32, i32
  }
  func.func @transform_4(%arg0: i32) -> (i32, i32) {
    %c0_i32 = arith.constant 0 : i32
    %c0_i32_0 = arith.constant 0 : i32
    return %c0_i32, %arg0 : i32, i32
  }
  func.func @transform_5(%arg0: i32) -> (i32, i32) {
    %c0_i32 = arith.constant 0 : i32
    %c0_i32_0 = arith.constant 0 : i32
    return %c0_i32, %arg0 : i32, i32
  }
}

</mosaic_0001>

<bundles_post_ra>
// kernel: forward.14
= control target key start
LH: loop header
LB: loop body
LE: loop exit
PB: predicated region body
PF: predicated region fallthrough
CT: control target
= control target key end

     0   :  { %s523_s15 = smov 0   ;;  %s525_s16 = smov 0   ;;  %s584_s0 = inlined_call_operand.vmem [shape: bf16[36,512], index: 0, kind: input, shape index: {}]   ;;  %s585_s1 = inlined_call_operand.vmem [shape: bf16[8,36], index: 1, kind: input, shape index: {}]   ;;  %s586_s2 = inlined_call_operand.vmem [shape: f32[8,1], index: 2, kind: input, shape index: {}]   ;;  %s587_s3 = inlined_call_operand.vmem [shape: f32[8,1], index: 3, kind: input, shape index: {}]   ;;  %s588_s4 = inlined_call_operand.vmem [shape: f32[8,512], index: 4, kind: output, shape index: {}]  }
   0x1   :  { %s527_s17 = smov 0  }
   0x2 LB: > { %s417_s18 = sadd.s32 4294967295, %s495_s17   ;;  %s540_s19 = sadd.s32 1, %s495_s17   ;;  %s495_s17 = sphi %s527_s17, %s591_s17   ;;  %s491_s16 = sphi %s525_s16, %s590_s16   ;;  %s487_s15 = sphi %s523_s15, %s589_s15  }
   0x3   : > { %s18_s20 = ssub.s32 %s495_s17, %s540_s19  ;;  %s21_s21 = sadd.s32 1, %s491_s16 }
   0x4   : > { %p19_p0 = scmp.eq.s32.totalorder %s18_s20, 0  ;;  %p28_p1 = scmp.ne.s32.totalorder %s491_s16, %s487_s15 }
   0x5   : > { %p29_p2 = scmp.eq.s32.totalorder %s495_s17, 0  ;;  %p420_p4 = scmp.ge.s32.totalorder %s495_s17, 2 }
   0x6   : > { %s549_s22 = scalar_select %p19_p0, %s491_s16, %s21_s21  }
   0x7   : > { %p30_p3 = por %p29_p2, %p28_p1  ;;  %152 = sbr.rel (%p420_p4) target bundleno = 21 (0x15), region = 28 }
   0xe   : > { %155 = sbr.rel (!%p30_p3) target bundleno = 21 (0x15), region = 32  ;;  %s157_s23 = sand.u32 (%p30_p3), 1, %s491_s16  }
   0xf   : > { %s436_s24 = sshll.u32 (%p30_p3), %s495_s17, 3  ;;  %s437_s25 = smul.u32 (%p30_p3), 40, %s157_s23 }
  0x10   : > { %s162_s28 = scalar_lea.vmem (%p30_p3), %s584_s0, %s436_s24 }
  0x11   : > { %v198_v0 = vld [vmem:[%s162_s28] sm:$0xff] (%p30_p3)  ;;  %v200_v1 = vld [vmem:[%s162_s28 + $0x10] sm:$0xff] (%p30_p3)  ;;  %s159_s29 = scalar_lea.vmem (%p30_p3), [#allocation2], %s437_s25 }
  0x12   : > { %v202_v2 = vld [vmem:[%s162_s28 + $0x20] sm:$0xff] (%p30_p3)  ;;  %v204_v3 = vld [vmem:[%s162_s28 + $0x30] sm:$0xff] (%p30_p3)  ;;  %199 = vst [vmem:[%s159_s29] sm:$0xff] (%p30_p3), %v198_v0  ;;  %201 = vst [vmem:[%s159_s29 + $0x8] sm:$0xff] (%p30_p3), %v200_v1 }
  0x13   : > { %v206_v4 = vld [vmem:[%s162_s28 + $0x40] sm:$0xff] (%p30_p3)  ;;  %203 = vst [vmem:[%s159_s29 + $0x10] sm:$0xff] (%p30_p3), %v202_v2  ;;  %205 = vst [vmem:[%s159_s29 + $0x18] sm:$0xff] (%p30_p3), %v204_v3 }
  0x14   : > { %207 = vst [vmem:[%s159_s29 + $0x20] sm:$0xff] (%p30_p3), %v206_v4 }
  0x15 PF: > { %p423_p5 = scmp.ge.s32.totalorder %s495_s17, 1  ;;  %p212_p6 = scmp.lt.s32.totalorder %s495_s17, 3 }
  0x17   : > { %p213_p7 = pnand %p423_p5, %p212_p6 }
  0x18   : > { %s219_s30 = sand.u32 (!%p213_p7), 1, %s487_s15   ;;  %v497_v5 = vmov (!%p213_p7), 0   ;;  %v335_v6 = vld [vmem:[%s586_s2] sm:$0xff] (!%p213_p7)  ;;  %vm287_vm0 = vcmask (!%p213_p7), 1041408   ;;  %vm283_vm1 = vcmask (!%p213_p7), 293888   ;;  %s424_s13 = sshll.u32 (!%p213_p7), %s417_s18, 1 }
  0x19   : > { %216 = sbr.rel (%p213_p7) target bundleno = 262 (0x106), region = 70  ;;  %326 = vmatprep.mubr.bf16.mxu0 (!%p213_p7), %v497_v5  ;;  %464 = vset.pattern.permute.xlu0 (!%p213_p7), %v497_v5  ;;  %v343_v7 = vld [vmem:[%s587_s3] sm:$0xff] (!%p213_p7)  ;;  %p246_p8 = scmp.lt.s32.totalorder (!%p213_p7), %s424_s13, 3 }
  0x1a   : > { %s438_s5 = smul.u32 (!%p213_p7), 40, %s219_s30  ;;  %338 = vperm.xlu0 (!%p213_p7), %464, %v335_v6   ;;  %v252_v16 = vld [vmem:[%s585_s1] sm:$0xf] (!%p213_p7) }
  0x1c   : > { %s221_s10 = scalar_lea.vmem (!%p213_p7), [#allocation2], %s438_s5 }
  0x1d   : > { %v465_v8 = vld [vmem:[%s221_s10 + $0x4] ss:$8 sps:$4 sm:$0xff] (!%p213_p7)   ;;  %v467_v9 = vld [vmem:[%s221_s10] ss:$8 sps:$4 sm:$0xff] (!%p213_p7)   ;;  %v468_v10 = vld [vmem:[%s221_s10 + $0x14] ss:$8 sps:$4 sm:$0xff] (!%p213_p7)  }
  0x1e   : > { %294 = vmatprep.subr.bf16.mxu0 (!%p213_p7), %v465_v8  ;;  %v257_v11 = vld [vmem:[%s221_s10 + $0x20] sm:$0x33] (!%p213_p7)  ;;  %346 = vperm.xlu0 (!%p213_p7), %464, %v343_v7   ;;  %v470_v12 = vld [vmem:[%s221_s10 + $0x10] ss:$8 sps:$4 sm:$0xff] (!%p213_p7)  }
  0x1f   : > { %295 = vmatpush1.bf16.msra.mxu0 (!%p213_p7), %v467_v9  ;;  %v431_v13 = vcombine.high (!%p213_p7), %v257_v11, %v257_v11  ;;  %v430_v14 = vcombine.low (!%p213_p7), %v257_v11, %v257_v11 }
  0x20   : > { %296 = vmatprep.subr.bf16.mxu0 %v468_v10  ;;  %s593_s13 = smov (!%p246_p8, %s424_s13), 3 }
  0x21   : > { %v289_v15 = vsel %vm287_vm0, %v430_v14, 0  ;;  %s425_s14 = sshll.u32 %s593_s13, 3 }
  0x22   : > { %s249_s21 = scalar_lea.vmem %s588_s4, %s425_s14 }
  0x23   : > { %297 = vmatpush1.bf16.msra.mxu0 %v470_v12 }
  0x24   : > { %432 = vmatprep.subr.msk.bf16.mxu0 %vm287_vm0, %v431_v13 }
  0x27   : > { %299 = vmatpush1.bf16.msra.mxu0 %v289_v15 }
  0x2a   : > { %433 = vmatmul.mubr.msk.bf16.vlgmr.msra.gmra.mrb[0].mxu0 %vm283_vm1, %v252_v16 }
  0x99   : > { %v339_v17 = vpop.permute.xlu0 %338 }
  0x9d   : > { %v347_v21 = vpop.permute.xlu0 %346 }
  0xfd   : > { %v328_v18 = vpop.f32.mrb[0].mxu0 }
  0xfe   : > { %v341_v19 = vmul.f32 %v339_v17, %v328_v18  ;;  %v330_v20 = vpop.f32.mrb[1].mxu0 }
  0xff   : > { %v342_v22 = vmul.f32 %v339_v17, %v330_v20  ;;  %v332_v23 = vpop.f32.mrb[2].mxu0 }
 0x100   : > { %v349_v24 = vadd.f32 %v347_v21, %v341_v19  ;;  %v333_v25 = vpop.f32.mrb[3].mxu0 }
 0x101   : > { %v350_v26 = vadd.f32 %v347_v21, %v342_v22 }
 0x102   : > { %v351_v27 = vmax.f32 %v349_v24, 0.0 }
 0x103   : > { %v352_v28 = vmax.f32 %v350_v26, 0.0 }
 0x104   : > { %353 = vst [vmem:[%s249_s21] sm:$0xff] %v351_v27 }
 0x105   : > { %354 = vst [vmem:[%s249_s21 + $0x8] sm:$0xff] %v352_v28 }
 0x106 PF: > { %p11_p9 = scmp.ge.s32.totalorder %s540_s19, 4   ;;  %s589_s15 = smov %s491_s16 }
 0x107   : > { %s590_s16 = smov %s549_s22  ;;  %s591_s17 = smov %s540_s19 }
 0x108   :  { %13 = sbr.rel (!%p11_p9) target bundleno = 2 (0x2), region = 109 }

// kernel: forward.15
= control target key start
LH: loop header
LB: loop body
LE: loop exit
PB: predicated region body
PF: predicated region fallthrough
CT: control target
= control target key end

     0   :  { %s397_s15 = smov 0   ;;  %s423_s0 = inlined_call_operand.vmem [shape: bf16[4,512], index: 0, kind: input, shape index: {}]   ;;  %s424_s1 = inlined_call_operand.vmem [shape: bf16[8,4], index: 1, kind: input, shape index: {}]   ;;  %s425_s2 = inlined_call_operand.vmem [shape: f32[8,1], index: 2, kind: input, shape index: {}]   ;;  %s426_s3 = inlined_call_operand.vmem [shape: f32[8,1], index: 3, kind: input, shape index: {}]   ;;  %s427_s4 = inlined_call_operand.vmem [shape: f32[8,512], index: 4, kind: output, shape index: {}]  }
   0x1 LB: > { %s339_s16 = sadd.s32 4294967295, %s369_s15   ;;  %p343_p0 = scmp.ge.s32.totalorder %s369_s15, 1  ;;  %s369_s15 = sphi %s397_s15, %s14_s15  }
   0x2   : > { %p163_p1 = scmp.lt.s32.totalorder %s369_s15, 3 }
   0x4   : > { %p164_p2 = pnand %p343_p0, %p163_p1 }
   0x5   : > { %s344_s17 = sshll.u32 (!%p164_p2), %s339_s16, 1  ;;  %v371_v0 = vmov (!%p164_p2), 0   ;;  %v265_v1 = vld [vmem:[%s425_s2] sm:$0xff] (!%p164_p2)  ;;  %vm217_vm0 = vcmask (!%p164_p2), 1041408   ;;  %vm213_vm1 = vcmask (!%p164_p2), 31744  }
   0x6   : > { %167 = sbr.rel (%p164_p2) target bundleno = 241 (0xf1), region = 36  ;;  %p190_p3 = scmp.lt.s32.totalorder (!%p164_p2), %s344_s17, 3  ;;  %256 = vmatprep.mubr.bf16.mxu0 (!%p164_p2), %v371_v0  ;;  %362 = vset.pattern.permute.xlu0 (!%p164_p2), %v371_v0  ;;  %v273_v2 = vld [vmem:[%s426_s3] sm:$0xff] (!%p164_p2) }
   0x7   : > { %268 = vperm.xlu0 (!%p164_p2), %362, %v265_v1   ;;  %v202_v6 = vld [vmem:[%s424_s1] sm:$0xf] (!%p164_p2) }
   0xb   : > { %276 = vperm.xlu0 (!%p164_p2), %362, %v273_v2  }
   0xd   : > { %s429_s17 = smov (!%p190_p3, %s344_s17), 3 }
   0xe   : > { %s345_s22 = sshll.u32 %s429_s17, 1  ;;  %s347_s28 = sshll.u32 %s429_s17, 3 }
   0xf   : > { %s193_s25 = scalar_lea.vmem %s423_s0, %s345_s22  ;;  %s199_s5 = scalar_lea.vmem %s427_s4, %s347_s28 }
  0x10   : > { %v348_v3 = vld.sshfl [vmem:[%s193_s25] sm:$0x33 pattern:$0x76325410] }
  0x11   : > { %v212_v4 = vcombine.high %v348_v3, %v348_v3  ;;  %v219_v5 = vsel %vm217_vm0, %v348_v3, 0 }
  0x13   : > { %349 = vmatprep.subr.msk.bf16.mxu0 %vm217_vm0, %v212_v4 }
  0x14   : > { %225 = vmatpush1.bf16.msra.mxu0 %v219_v5 }
  0x17   : > { %350 = vmatmul.mubr.msk.bf16.vlgmr.msra.gmra.mrb[0].mxu0 %vm213_vm1, %v202_v6 }
  0x86   : > { %v269_v7 = vpop.permute.xlu0 %268 }
  0x8a   : > { %v277_v11 = vpop.permute.xlu0 %276 }
  0xea   : > { %v258_v8 = vpop.f32.mrb[0].mxu0 }
  0xeb   : > { %v271_v9 = vmul.f32 %v269_v7, %v258_v8  ;;  %v260_v10 = vpop.f32.mrb[1].mxu0 }
  0xec   : > { %v272_v12 = vmul.f32 %v269_v7, %v260_v10  ;;  %v262_v13 = vpop.f32.mrb[2].mxu0 }
  0xed   : > { %v279_v14 = vadd.f32 %v277_v11, %v271_v9  ;;  %v263_v15 = vpop.f32.mrb[3].mxu0 }
  0xee   : > { %v280_v16 = vadd.f32 %v277_v11, %v272_v12 }
  0xef   : > { %281 = vst [vmem:[%s199_s5] sm:$0xff] %v279_v14 }
  0xf0   : > { %282 = vst [vmem:[%s199_s5 + $0x8] sm:$0xff] %v280_v16 }
  0xf1 PF: > { %s14_s15 = sadd.s32 1, %s369_s15  }
  0xf2   : > { %p11_p4 = scmp.ge.s32.totalorder %s14_s15, 4  }
  0xf4   :  { %13 = sbr.rel (!%p11_p4) target bundleno = 1 (0x1), region = 66 }

// kernel: forward.16
= control target key start
LH: loop header
LB: loop body
LE: loop exit
PB: predicated region body
PF: predicated region fallthrough
CT: control target
= control target key end

     0   :  { %s645_s18 = smov 0   ;;  %s647_s19 = smov 0   ;;  %s709_s0 = inlined_call_operand.vmem [shape: bf16[72,512], index: 0, kind: input, shape index: {}]   ;;  %s710_s1 = inlined_call_operand.vmem [shape: bf16[8,72], index: 1, kind: input, shape index: {}]   ;;  %s711_s2 = inlined_call_operand.vmem [shape: f32[8,1], index: 2, kind: input, shape index: {}]   ;;  %s712_s3 = inlined_call_operand.vmem [shape: f32[8,1], index: 3, kind: input, shape index: {}]   ;;  %s713_s4 = inlined_call_operand.vmem [shape: f32[8,512], index: 4, kind: input, shape index: {}]   ;;  %s714_s5 = inlined_call_operand.vmem [shape: f32[8,512], index: 5, kind: output, shape index: {}]  }
   0x1   :  { %s649_s20 = smov 0  }
   0x2 LB: > { %s522_s21 = sadd.s32 4294967295, %s612_s20   ;;  %s662_s22 = sadd.s32 1, %s612_s20   ;;  %s612_s20 = sphi %s649_s20, %s717_s20   ;;  %s608_s19 = sphi %s647_s19, %s716_s19   ;;  %s604_s18 = sphi %s645_s18, %s715_s18  }
   0x3   : > { %s19_s23 = ssub.s32 %s612_s20, %s662_s22  ;;  %s22_s24 = sadd.s32 1, %s608_s19 }
   0x4   : > { %p20_p0 = scmp.eq.s32.totalorder %s19_s23, 0  ;;  %p29_p1 = scmp.ne.s32.totalorder %s608_s19, %s604_s18 }
   0x5   : > { %p30_p2 = scmp.eq.s32.totalorder %s612_s20, 0  ;;  %p525_p4 = scmp.ge.s32.totalorder %s612_s20, 2 }
   0x6   : > { %s671_s25 = scalar_select %p20_p0, %s608_s19, %s22_s24  }
   0x7   : > { %p31_p3 = por %p30_p2, %p29_p1  ;;  %179 = sbr.rel (%p525_p4) target bundleno = 23 (0x17), region = 28 }
   0xe   : > { %182 = sbr.rel (!%p31_p3) target bundleno = 23 (0x17), region = 32  ;;  %s184_s26 = sand.u32 (%p31_p3), 1, %s608_s19  }
   0xf   : > { %s547_s27 = sshll.u32 (%p31_p3), %s612_s20, 3  ;;  %s548_s28 = smul.u32 (%p31_p3), 72, %s184_s26 }
  0x10   : > { %s189_s6 = scalar_lea.vmem (%p31_p3), %s709_s0, %s547_s27 }
  0x11   : > { %v233_v0 = vld [vmem:[%s189_s6] sm:$0xff] (%p31_p3)  ;;  %v235_v1 = vld [vmem:[%s189_s6 + $0x10] sm:$0xff] (%p31_p3)  ;;  %s186_s7 = scalar_lea.vmem (%p31_p3), [#allocation2], %s548_s28 }
  0x12   : > { %v237_v2 = vld [vmem:[%s189_s6 + $0x20] sm:$0xff] (%p31_p3)  ;;  %v239_v3 = vld [vmem:[%s189_s6 + $0x30] sm:$0xff] (%p31_p3)  ;;  %234 = vst [vmem:[%s186_s7] sm:$0xff] (%p31_p3), %v233_v0  ;;  %236 = vst [vmem:[%s186_s7 + $0x8] sm:$0xff] (%p31_p3), %v235_v1 }
  0x13   : > { %v241_v4 = vld [vmem:[%s189_s6 + $0x40] sm:$0xff] (%p31_p3)  ;;  %v243_v5 = vld [vmem:[%s189_s6 + $0x50] sm:$0xff] (%p31_p3)  ;;  %238 = vst [vmem:[%s186_s7 + $0x10] sm:$0xff] (%p31_p3), %v237_v2  ;;  %240 = vst [vmem:[%s186_s7 + $0x18] sm:$0xff] (%p31_p3), %v239_v3 }
  0x14   : > { %242 = vst [vmem:[%s186_s7 + $0x20] sm:$0xff] (%p31_p3), %v241_v4  ;;  %244 = vst [vmem:[%s186_s7 + $0x28] sm:$0xff] (%p31_p3), %v243_v5  ;;  %v245_v6 = vld [vmem:[%s189_s6 + $0x60] sm:$0xff] (%p31_p3)  ;;  %v247_v7 = vld [vmem:[%s189_s6 + $0x70] sm:$0xff] (%p31_p3) }
  0x15   : > { %v249_v8 = vld [vmem:[%s189_s6 + $0x80] sm:$0xff]  ;;  %246 = vst [vmem:[%s186_s7 + $0x30] sm:$0xff] %v245_v6  ;;  %248 = vst [vmem:[%s186_s7 + $0x38] sm:$0xff] %v247_v7 }
  0x16   : > { %250 = vst [vmem:[%s186_s7 + $0x40] sm:$0xff] %v249_v8 }
  0x17 PF: > { %p528_p5 = scmp.ge.s32.totalorder %s612_s20, 1  ;;  %p264_p6 = scmp.lt.s32.totalorder %s612_s20, 3 }
  0x19   : > { %p265_p7 = pnand %p528_p5, %p264_p6 }
  0x1a   : > { %s271_s8 = sand.u32 (!%p265_p7), 1, %s604_s18   ;;  %v614_v9 = vmov (!%p265_p7), 0   ;;  %v424_v10 = vld [vmem:[%s711_s2] sm:$0xff] (!%p265_p7)  ;;  %vm376_vm0 = vcmask (!%p265_p7), 1043456   ;;  %vm372_vm1 = vcmask (!%p265_p7), 588800   ;;  %s529_s17 = sshll.u32 (!%p265_p7), %s522_s21, 1 }
  0x1b   : > { %268 = sbr.rel (%p265_p7) target bundleno = 274 (0x112), region = 74  ;;  %415 = vmatprep.mubr.bf16.mxu0 (!%p265_p7), %v614_v9  ;;  %575 = vset.pattern.permute.xlu0 (!%p265_p7), %v614_v9  ;;  %v432_v11 = vld [vmem:[%s712_s3] sm:$0xff] (!%p265_p7)  ;;  %p305_p8 = scmp.lt.s32.totalorder (!%p265_p7), %s529_s17, 3 }
  0x1c   : > { %s549_s9 = smul.u32 (!%p265_p7), 72, %s271_s8  ;;  %427 = vperm.xlu0 (!%p265_p7), %575, %v424_v10   ;;  %v317_v24 = vld [vmem:[%s710_s1] sm:$0xf] (!%p265_p7) }
  0x1e   : > { %s273_s14 = scalar_lea.vmem (!%p265_p7), [#allocation2], %s549_s9 }
  0x1f   : > { %v576_v12 = vld [vmem:[%s273_s14 + $0x4] ss:$8 sps:$4 sm:$0xff] (!%p265_p7)   ;;  %v578_v13 = vld [vmem:[%s273_s14] ss:$8 sps:$4 sm:$0xff] (!%p265_p7)   ;;  %v579_v14 = vld [vmem:[%s273_s14 + $0x14] ss:$8 sps:$4 sm:$0xff] (!%p265_p7)  }
  0x20   : > { %383 = vmatprep.subr.bf16.mxu0 (!%p265_p7), %v576_v12  ;;  %435 = vperm.xlu0 (!%p265_p7), %575, %v432_v11   ;;  %v581_v15 = vld [vmem:[%s273_s14 + $0x10] ss:$8 sps:$4 sm:$0xff] (!%p265_p7)   ;;  %v582_v16 = vld [vmem:[%s273_s14 + $0x24] ss:$8 sps:$4 sm:$0xff] (!%p265_p7)   ;;  %v584_v17 = vld [vmem:[%s273_s14 + $0x20] ss:$8 sps:$4 sm:$0xff] (!%p265_p7)  }
  0x21   : > { %384 = vmatpush1.bf16.msra.mxu0 (!%p265_p7), %v578_v13  ;;  %v585_v18 = vld [vmem:[%s273_s14 + $0x34] ss:$8 sps:$4 sm:$0xff] (!%p265_p7)   ;;  %v326_v19 = vld [vmem:[%s273_s14 + $0x40] sm:$0xff] (!%p265_p7)  ;;  %v587_v20 = vld [vmem:[%s273_s14 + $0x30] ss:$8 sps:$4 sm:$0xff] (!%p265_p7)  }
  0x22   : > { %385 = vmatprep.subr.bf16.mxu0 %v579_v14  ;;  %v542_v21 = vcombine.high %v326_v19, %v326_v19  ;;  %v541_v22 = vcombine.low %v326_v19, %v326_v19  ;;  %s719_s17 = smov (!%p305_p8, %s529_s17), 3 }
  0x23   : > { %s530_s18 = sshll.u32 %s719_s17, 3 }
  0x24   : > { %v378_v23 = vsel %vm376_vm0, %v541_v22, 0  ;;  %s308_s26 = scalar_lea.vmem %s713_s4, %s530_s18  ;;  %s314_s27 = scalar_lea.vmem %s714_s5, %s530_s18 }
  0x25   : > { %386 = vmatpush1.bf16.msra.mxu0 %v581_v15  ;;  %v440_v30 = vld [vmem:[%s308_s26] sm:$0xff]  ;;  %v441_v34 = vld [vmem:[%s308_s26 + $0x8] sm:$0xff] }
  0x26   : > { %387 = vmatprep.subr.bf16.mxu0 %v582_v16 }
  0x29   : > { %388 = vmatpush1.bf16.msra.mxu0 %v584_v17 }
  0x2a   : > { %389 = vmatprep.subr.bf16.mxu0 %v585_v18 }
  0x2d   : > { %390 = vmatpush1.bf16.msra.mxu0 %v587_v20 }
  0x2e   : > { %543 = vmatprep.subr.msk.bf16.mxu0 %vm376_vm0, %v542_v21 }
  0x31   : > { %392 = vmatpush1.bf16.msra.mxu0 %v378_v23 }
  0x34   : > { %544 = vmatmul.mubr.msk.bf16.vlgmr.msra.gmra.mrb[0].mxu0 %vm372_vm1, %v317_v24 }
  0x9b   : > { %v428_v25 = vpop.permute.xlu0 %427 }
  0x9f   : > { %v436_v29 = vpop.permute.xlu0 %435 }
 0x107   : > { %v417_v26 = vpop.f32.mrb[0].mxu0 }
 0x108   : > { %v430_v27 = vmul.f32 %v428_v25, %v417_v26  ;;  %v419_v28 = vpop.f32.mrb[1].mxu0 }
 0x109   : > { %v431_v31 = vmul.f32 %v428_v25, %v419_v28  ;;  %v421_v32 = vpop.f32.mrb[2].mxu0 }
 0x10a   : > { %v438_v33 = vadd.f32 %v436_v29, %v430_v27  ;;  %v422_v35 = vpop.f32.mrb[3].mxu0 }
 0x10b   : > { %v439_v36 = vadd.f32 %v436_v29, %v431_v31 }
 0x10c   : > { %v442_v37 = vadd.f32 %v440_v30, %v438_v33 }
 0x10d   : > { %v443_v38 = vadd.f32 %v441_v34, %v439_v36 }
 0x10e   : > { %v444_v39 = vmax.f32 %v442_v37, 0.0 }
 0x10f   : > { %v445_v40 = vmax.f32 %v443_v38, 0.0 }
 0x110   : > { %446 = vst [vmem:[%s314_s27] sm:$0xff] %v444_v39 }
 0x111   : > { %447 = vst [vmem:[%s314_s27 + $0x8] sm:$0xff] %v445_v40 }
 0x112 PF: > { %p12_p9 = scmp.ge.s32.totalorder %s662_s22, 4   ;;  %s715_s18 = smov %s608_s19 }
 0x113   : > { %s716_s19 = smov %s671_s25  ;;  %s717_s20 = smov %s662_s22 }
 0x114   :  { %14 = sbr.rel (!%p12_p9) target bundleno = 2 (0x2), region = 116 }

// kernel: forward.20
= control target key start
LH: loop header
LB: loop body
LE: loop exit
PB: predicated region body
PF: predicated region fallthrough
CT: control target
= control target key end

     0   :  { %s573_s15 = smov 0   ;;  %s575_s16 = smov 0   ;;  %s634_s0 = inlined_call_operand.vmem [shape: bf16[72,512], index: 0, kind: input, shape index: {}]   ;;  %s635_s1 = inlined_call_operand.vmem [shape: bf16[8,72], index: 1, kind: input, shape index: {}]   ;;  %s636_s2 = inlined_call_operand.vmem [shape: f32[8,1], index: 2, kind: input, shape index: {}]   ;;  %s637_s3 = inlined_call_operand.vmem [shape: f32[8,1], index: 3, kind: input, shape index: {}]   ;;  %s638_s4 = inlined_call_operand.vmem [shape: f32[8,512], index: 4, kind: output, shape index: {}]  }
   0x1   :  { %s577_s17 = smov 0  }
   0x2 LB: > { %s457_s18 = sadd.s32 4294967295, %s545_s17   ;;  %s590_s19 = sadd.s32 1, %s545_s17   ;;  %s545_s17 = sphi %s577_s17, %s641_s17   ;;  %s541_s16 = sphi %s575_s16, %s640_s16   ;;  %s537_s15 = sphi %s573_s15, %s639_s15  }
   0x3   : > { %s18_s20 = ssub.s32 %s545_s17, %s590_s19  ;;  %s21_s21 = sadd.s32 1, %s541_s16 }
   0x4   : > { %p19_p0 = scmp.eq.s32.totalorder %s18_s20, 0  ;;  %p28_p1 = scmp.ne.s32.totalorder %s541_s16, %s537_s15 }
   0x5   : > { %p29_p2 = scmp.eq.s32.totalorder %s545_s17, 0  ;;  %p460_p4 = scmp.ge.s32.totalorder %s545_s17, 2 }
   0x6   : > { %s599_s22 = scalar_select %p19_p0, %s541_s16, %s21_s21  }
   0x7   : > { %p30_p3 = por %p29_p2, %p28_p1  ;;  %152 = sbr.rel (%p460_p4) target bundleno = 23 (0x17), region = 28 }
   0xe   : > { %155 = sbr.rel (!%p30_p3) target bundleno = 23 (0x17), region = 32  ;;  %s157_s23 = sand.u32 (%p30_p3), 1, %s541_s16  }
   0xf   : > { %s480_s24 = sshll.u32 (%p30_p3), %s545_s17, 3  ;;  %s481_s25 = smul.u32 (%p30_p3), 72, %s157_s23 }
  0x10   : > { %s162_s28 = scalar_lea.vmem (%p30_p3), %s634_s0, %s480_s24 }
  0x11   : > { %v206_v0 = vld [vmem:[%s162_s28] sm:$0xff] (%p30_p3)  ;;  %v208_v1 = vld [vmem:[%s162_s28 + $0x10] sm:$0xff] (%p30_p3)  ;;  %s159_s29 = scalar_lea.vmem (%p30_p3), [#allocation2], %s481_s25 }
  0x12   : > { %v210_v2 = vld [vmem:[%s162_s28 + $0x20] sm:$0xff] (%p30_p3)  ;;  %v212_v3 = vld [vmem:[%s162_s28 + $0x30] sm:$0xff] (%p30_p3)  ;;  %207 = vst [vmem:[%s159_s29] sm:$0xff] (%p30_p3), %v206_v0  ;;  %209 = vst [vmem:[%s159_s29 + $0x8] sm:$0xff] (%p30_p3), %v208_v1 }
  0x13   : > { %v214_v4 = vld [vmem:[%s162_s28 + $0x40] sm:$0xff] (%p30_p3)  ;;  %v216_v5 = vld [vmem:[%s162_s28 + $0x50] sm:$0xff] (%p30_p3)  ;;  %211 = vst [vmem:[%s159_s29 + $0x10] sm:$0xff] (%p30_p3), %v210_v2  ;;  %213 = vst [vmem:[%s159_s29 + $0x18] sm:$0xff] (%p30_p3), %v212_v3 }
  0x14   : > { %215 = vst [vmem:[%s159_s29 + $0x20] sm:$0xff] (%p30_p3), %v214_v4  ;;  %217 = vst [vmem:[%s159_s29 + $0x28] sm:$0xff] (%p30_p3), %v216_v5  ;;  %v218_v6 = vld [vmem:[%s162_s28 + $0x60] sm:$0xff] (%p30_p3)  ;;  %v220_v7 = vld [vmem:[%s162_s28 + $0x70] sm:$0xff] (%p30_p3) }
  0x15   : > { %v222_v8 = vld [vmem:[%s162_s28 + $0x80] sm:$0xff]  ;;  %219 = vst [vmem:[%s159_s29 + $0x30] sm:$0xff] %v218_v6  ;;  %221 = vst [vmem:[%s159_s29 + $0x38] sm:$0xff] %v220_v7 }
  0x16   : > { %223 = vst [vmem:[%s159_s29 + $0x40] sm:$0xff] %v222_v8 }
  0x17 PF: > { %p463_p5 = scmp.ge.s32.totalorder %s545_s17, 1  ;;  %p228_p6 = scmp.lt.s32.totalorder %s545_s17, 3 }
  0x19   : > { %p229_p7 = pnand %p463_p5, %p228_p6 }
  0x1a   : > { %s235_s30 = sand.u32 (!%p229_p7), 1, %s537_s15   ;;  %v547_v9 = vmov (!%p229_p7), 0   ;;  %v375_v10 = vld [vmem:[%s636_s2] sm:$0xff] (!%p229_p7)  ;;  %vm327_vm0 = vcmask (!%p229_p7), 1043456   ;;  %vm323_vm1 = vcmask (!%p229_p7), 588800   ;;  %s464_s13 = sshll.u32 (!%p229_p7), %s457_s18, 1 }
  0x1b   : > { %232 = sbr.rel (%p229_p7) target bundleno = 272 (0x110), region = 70  ;;  %366 = vmatprep.mubr.bf16.mxu0 (!%p229_p7), %v547_v9  ;;  %508 = vset.pattern.permute.xlu0 (!%p229_p7), %v547_v9  ;;  %v383_v11 = vld [vmem:[%s637_s3] sm:$0xff] (!%p229_p7)  ;;  %p262_p8 = scmp.lt.s32.totalorder (!%p229_p7), %s464_s13, 3 }
  0x1c   : > { %s482_s5 = smul.u32 (!%p229_p7), 72, %s235_s30  ;;  %378 = vperm.xlu0 (!%p229_p7), %508, %v375_v10   ;;  %v268_v24 = vld [vmem:[%s635_s1] sm:$0xf] (!%p229_p7) }
  0x1e   : > { %s237_s10 = scalar_lea.vmem (!%p229_p7), [#allocation2], %s482_s5 }
  0x1f   : > { %v509_v12 = vld [vmem:[%s237_s10 + $0x4] ss:$8 sps:$4 sm:$0xff] (!%p229_p7)   ;;  %v511_v13 = vld [vmem:[%s237_s10] ss:$8 sps:$4 sm:$0xff] (!%p229_p7)   ;;  %v512_v14 = vld [vmem:[%s237_s10 + $0x14] ss:$8 sps:$4 sm:$0xff] (!%p229_p7)  }
  0x20   : > { %334 = vmatprep.subr.bf16.mxu0 (!%p229_p7), %v509_v12  ;;  %386 = vperm.xlu0 (!%p229_p7), %508, %v383_v11   ;;  %v514_v15 = vld [vmem:[%s237_s10 + $0x10] ss:$8 sps:$4 sm:$0xff] (!%p229_p7)   ;;  %v515_v16 = vld [vmem:[%s237_s10 + $0x24] ss:$8 sps:$4 sm:$0xff] (!%p229_p7)   ;;  %v517_v17 = vld [vmem:[%s237_s10 + $0x20] ss:$8 sps:$4 sm:$0xff] (!%p229_p7)  }
  0x21   : > { %335 = vmatpush1.bf16.msra.mxu0 (!%p229_p7), %v511_v13  ;;  %v518_v18 = vld [vmem:[%s237_s10 + $0x34] ss:$8 sps:$4 sm:$0xff] (!%p229_p7)   ;;  %v277_v19 = vld [vmem:[%s237_s10 + $0x40] sm:$0xff] (!%p229_p7)  ;;  %v520_v20 = vld [vmem:[%s237_s10 + $0x30] ss:$8 sps:$4 sm:$0xff] (!%p229_p7)  }
  0x22   : > { %336 = vmatprep.subr.bf16.mxu0 %v512_v14  ;;  %v475_v21 = vcombine.high %v277_v19, %v277_v19  ;;  %v474_v22 = vcombine.low %v277_v19, %v277_v19  ;;  %s643_s13 = smov (!%p262_p8, %s464_s13), 3 }
  0x23   : > { %s465_s14 = sshll.u32 %s643_s13, 3 }
  0x24   : > { %v329_v23 = vsel %vm327_vm0, %v474_v22, 0  ;;  %s265_s21 = scalar_lea.vmem %s638_s4, %s465_s14 }
  0x25   : > { %337 = vmatpush1.bf16.msra.mxu0 %v514_v15 }
  0x26   : > { %338 = vmatprep.subr.bf16.mxu0 %v515_v16 }
  0x29   : > { %339 = vmatpush1.bf16.msra.mxu0 %v517_v17 }
  0x2a   : > { %340 = vmatprep.subr.bf16.mxu0 %v518_v18 }
  0x2d   : > { %341 = vmatpush1.bf16.msra.mxu0 %v520_v20 }
  0x2e   : > { %476 = vmatprep.subr.msk.bf16.mxu0 %vm327_vm0, %v475_v21 }
  0x31   : > { %343 = vmatpush1.bf16.msra.mxu0 %v329_v23 }
  0x34   : > { %477 = vmatmul.mubr.msk.bf16.vlgmr.msra.gmra.mrb[0].mxu0 %vm323_vm1, %v268_v24 }
  0x9b   : > { %v379_v25 = vpop.permute.xlu0 %378 }
  0x9f   : > { %v387_v29 = vpop.permute.xlu0 %386 }
 0x107   : > { %v368_v26 = vpop.f32.mrb[0].mxu0 }
 0x108   : > { %v381_v27 = vmul.f32 %v379_v25, %v368_v26  ;;  %v370_v28 = vpop.f32.mrb[1].mxu0 }
 0x109   : > { %v382_v30 = vmul.f32 %v379_v25, %v370_v28  ;;  %v372_v31 = vpop.f32.mrb[2].mxu0 }
 0x10a   : > { %v389_v32 = vadd.f32 %v387_v29, %v381_v27  ;;  %v373_v33 = vpop.f32.mrb[3].mxu0 }
 0x10b   : > { %v390_v34 = vadd.f32 %v387_v29, %v382_v30 }
 0x10c   : > { %v391_v35 = vmax.f32 %v389_v32, 0.0 }
 0x10d   : > { %v392_v36 = vmax.f32 %v390_v34, 0.0 }
 0x10e   : > { %393 = vst [vmem:[%s265_s21] sm:$0xff] %v391_v35 }
 0x10f   : > { %394 = vst [vmem:[%s265_s21 + $0x8] sm:$0xff] %v392_v36 }
 0x110 PF: > { %p11_p9 = scmp.ge.s32.totalorder %s590_s19, 4   ;;  %s639_s15 = smov %s541_s16 }
 0x111   : > { %s640_s16 = smov %s599_s22  ;;  %s641_s17 = smov %s590_s19 }
 0x112   :  { %13 = sbr.rel (!%p11_p9) target bundleno = 2 (0x2), region = 109 }

// kernel: forward.22
= control target key start
LH: loop header
LB: loop body
LE: loop exit
PB: predicated region body
PF: predicated region fallthrough
CT: control target
= control target key end

     0   :  { %s540_s18 = smov 0   ;;  %s573_s0 = inlined_call_operand.vmem [shape: bf16[8,16], index: 0, kind: input, shape index: {}]   ;;  %s574_s1 = inlined_call_operand.vmem [shape: f32[8,1], index: 1, kind: input, shape index: {}]   ;;  %s575_s2 = inlined_call_operand.vmem [shape: f32[8,1], index: 2, kind: input, shape index: {}]   ;;  %s576_s3 = inlined_call_operand.vmem [shape: bf16[8,512], index: 3, kind: input, shape index: {}]   ;;  %s577_s4 = inlined_call_operand.vmem [shape: bf16[8,512], index: 4, kind: input, shape index: {}]   ;;  %s578_s5 = inlined_call_operand.vmem [shape: f32[8,512], index: 5, kind: output, shape index: {}]  }
   0x1 LB: > { %s459_s19 = sadd.s32 4294967295, %s506_s18   ;;  %p463_p0 = scmp.ge.s32.totalorder %s506_s18, 1  ;;  %s506_s18 = sphi %s540_s18, %s15_s18  }
   0x2   : > { %p199_p1 = scmp.lt.s32.totalorder %s506_s18, 3 }
   0x4   : > { %p200_p2 = pnand %p463_p0, %p199_p1 }
   0x5   : > { %v251_v0 = vld [vmem:[%s573_s0] sm:$0xf] (!%p200_p2)  ;;  %s464_s22 = sshll.u32 (!%p200_p2), %s459_s19, 1  ;;  %v508_v2 = vmov (!%p200_p2), 0   ;;  %s509_s25 = smov (!%p200_p2), 120   ;;  %vm268_vm0 = vcmask (!%p200_p2), 1043456  }
   0x6   : > { %203 = sbr.rel (%p200_p2) target bundleno = 345 (0x159), region = 40  ;;  %v470_v1 = vcombine.low (!%p200_p2), %v251_v0, %v251_v0  ;;  %p233_p3 = scmp.lt.s32.totalorder (!%p200_p2), %s464_s22, 3  ;;  %362 = vmatprep.mubr.bf16.mxu0 (!%p200_p2), %v508_v2  ;;  %307 = vmatprep.mubr.bf16.mxu1 (!%p200_p2), %v508_v2  ;;  %v379_v3 = vld [vmem:[%s575_s2] sm:$0xff] (!%p200_p2)  ;;  %vm264_vm1 = vcmask (!%p200_p2), 64512  }
   0x7   : > { %493 = vset.pattern.permute.xlu0 (!%p200_p2), %v508_v2  ;;  %494 = vset.pattern.permute.xlu1 (!%p200_p2), %v508_v2  ;;  %v371_v4 = vld [vmem:[%s574_s1] sm:$0xff] (!%p200_p2) }
   0x8   : > { %257 = vrot.lane.b32.xlu0 (!%p200_p2), %v470_v1, %s509_s25  ;;  %382 = vperm.xlu1 (!%p200_p2), %494, %v379_v3  }
   0xc   : > { %374 = vperm.xlu0 (!%p200_p2), %493, %v371_v4  }
   0xd   : > { %s580_s22 = smov (!%p233_p3, %s464_s22), 3 }
   0xe   : > { %s465_s28 = sshll.u32 %s580_s22, 2  ;;  %s469_s10 = sshll.u32 %s580_s22, 3 }
   0xf   : > { %s236_s6 = scalar_lea.vmem %s576_s3, %s465_s28  ;;  %s242_s9 = scalar_lea.vmem %s577_s4, %s465_s28 }
  0x10   : > { %v252_v5 = vld [vmem:[%s236_s6] sm:$0xff]  ;;  %s248_s13 = scalar_lea.vmem %s578_s5, %s469_s10 }
  0x11   : > { %v253_v6 = vld [vmem:[%s242_s9] sm:$0xff]  ;;  %v476_v7 = vcombine.high %v252_v5, %v252_v5  ;;  %v475_v8 = vcombine.low %v252_v5, %v252_v5 }
  0x12   : > { %v472_v9 = vcombine.high %v253_v6, %v253_v6  ;;  %v471_v10 = vcombine.low %v253_v6, %v253_v6 }
  0x13   : > { %477 = vmatprep.subr.msk.bf16.mxu0 %vm268_vm0, %v476_v7  ;;  %v325_v11 = vsel %vm268_vm0, %v475_v8, 0 }
  0x14   : > { %473 = vmatprep.subr.msk.bf16.mxu1 %vm268_vm0, %v472_v9  ;;  %v270_v12 = vsel %vm268_vm0, %v471_v10, 0  ;;  %331 = vmatpush1.bf16.msra.mxu0 %v325_v11 }
  0x15   : > { %276 = vmatpush1.bf16.msra.mxu1 %v270_v12 }
  0x17   : > { %478 = vmatmul.mubr.msk.bf16.vlgmr.msra.gmra.mrb[0].mxu0 %vm264_vm1, %v251_v0 }
  0x7a   : > { %v258_v13 = vpop.permute.xlu0 %257 }
  0x7b   : > { %474 = vmatmul.mubr.msk.bf16.vlgmr.msra.gmra.mrb[0].mxu1 %vm264_vm1, %v258_v13 }
  0x87   : > { %v383_v24 = vpop.permute.xlu1 %382 }
  0x8b   : > { %v375_v19 = vpop.permute.xlu0 %374 }
  0xea   : > { %v364_v14 = vpop.f32.mrb[0].mxu0 }
  0xeb   : > { %v366_v15 = vpop.f32.mrb[1].mxu0 }
  0xec   : > { %v368_v16 = vpop.f32.mrb[2].mxu0 }
  0xed   : > { %v369_v17 = vpop.f32.mrb[3].mxu0 }
 0x14e   : > { %v309_v18 = vpop.f32.mrb[0].mxu1 }
 0x14f   : > { %v365_v20 = vadd.f32 %v364_v14, %v309_v18  ;;  %v311_v21 = vpop.f32.mrb[1].mxu1 }
 0x150   : > { %v367_v22 = vadd.f32 %v366_v15, %v311_v21  ;;  %v313_v23 = vpop.f32.mrb[2].mxu1 }
 0x151   : > { %v377_v25 = vmul.f32 %v375_v19, %v365_v20  ;;  %v314_v26 = vpop.f32.mrb[3].mxu1 }
 0x152   : > { %v378_v27 = vmul.f32 %v375_v19, %v367_v22 }
 0x153   : > { %v385_v28 = vadd.f32 %v383_v24, %v377_v25 }
 0x154   : > { %v386_v29 = vadd.f32 %v383_v24, %v378_v27 }
 0x155   : > { %v387_v30 = vmax.f32 %v385_v28, 0.0 }
 0x156   : > { %v388_v31 = vmax.f32 %v386_v29, 0.0 }
 0x157   : > { %389 = vst [vmem:[%s248_s13] sm:$0xff] %v387_v30 }
 0x158   : > { %390 = vst [vmem:[%s248_s13 + $0x8] sm:$0xff] %v388_v31 }
 0x159 PF: > { %s15_s18 = sadd.s32 1, %s506_s18  }
 0x15a   : > { %p12_p4 = scmp.ge.s32.totalorder %s15_s18, 4  }
 0x15c   :  { %14 = sbr.rel (!%p12_p4) target bundleno = 1 (0x1), region = 73 }

// kernel: forward.27
= control target key start
LH: loop header
LB: loop body
LE: loop exit
PB: predicated region body
PF: predicated region fallthrough
CT: control target
= control target key end

     0   :  { %s820_s24 = smov 0   ;;  %s867_s0 = inlined_call_operand.vmem [shape: bf16[8,32], index: 0, kind: input, shape index: {}]   ;;  %s868_s1 = inlined_call_operand.vmem [shape: f32[8,1], index: 1, kind: input, shape index: {}]   ;;  %s869_s2 = inlined_call_operand.vmem [shape: f32[8,1], index: 2, kind: input, shape index: {}]   ;;  %s870_s3 = inlined_call_operand.vmem [shape: bf16[8,512], index: 3, kind: input, shape index: {}]   ;;  %s871_s4 = inlined_call_operand.vmem [shape: bf16[8,512], index: 4, kind: input, shape index: {}]   ;;  %s872_s5 = inlined_call_operand.vmem [shape: bf16[8,512], index: 5, kind: input, shape index: {}]   ;;  %s873_s6 = inlined_call_operand.vmem [shape: bf16[8,512], index: 6, kind: input, shape index: {}]   ;;  %s874_s7 = inlined_call_operand.vmem [shape: f32[8,512], index: 7, kind: output, shape index: {}]  }
   0x1 LB: > { %s701_s25 = sadd.s32 4294967295, %s774_s24   ;;  %p705_p0 = scmp.ge.s32.totalorder %s774_s24, 1  ;;  %s774_s24 = sphi %s820_s24, %s17_s24  }
   0x2   : > { %p271_p1 = scmp.lt.s32.totalorder %s774_s24, 3 }
   0x4   : > { %p272_p2 = pnand %p705_p0, %p271_p1 }
   0x5   : > { %v349_v0 = vld [vmem:[%s867_s0] sm:$0xf] (!%p272_p2)  ;;  %s706_s28 = sshll.u32 (!%p272_p2), %s701_s25, 1  ;;  %v776_v2 = vmov (!%p272_p2), 0   ;;  %s777_s29 = smov (!%p272_p2), 120   ;;  %vm366_vm0 = vcmask (!%p272_p2), 1043456  }
   0x6   : > { %275 = sbr.rel (%p272_p2) target bundleno = 361 (0x169), region = 48  ;;  %v716_v1 = vcombine.low (!%p272_p2), %v349_v0, %v349_v0  ;;  %405 = vmatprep.mubr.bf16.mxu1 (!%p272_p2), %v776_v2  ;;  %518 = vmatprep.mubr.bf16.mxu0 (!%p272_p2), %v776_v2  ;;  %p319_p3 = scmp.lt.s32.totalorder (!%p272_p2), %s706_s28, 3  ;;  %v589_v3 = vld [vmem:[%s868_s1] sm:$0xff] (!%p272_p2)  ;;  %vm362_vm1 = vcmask (!%p272_p2), 64512  }
   0x7   : > { %757 = vset.pattern.permute.xlu1 (!%p272_p2), %v776_v2  ;;  %758 = vset.pattern.permute.xlu0 (!%p272_p2), %v776_v2  ;;  %s778_s30 = smov (!%p272_p2), 104   ;;  %s779_s11 = smov (!%p272_p2), 112   ;;  %v597_v18 = vld [vmem:[%s869_s2] sm:$0xff] (!%p272_p2) }
   0x8   : > { %355 = vrot.lane.b32.xlu0 (!%p272_p2), %v716_v1, %s777_s29  ;;  %530 = vrot.lane.b32.xlu1 (!%p272_p2), %v716_v1, %s778_s30 }
   0xc   : > { %470 = vrot.lane.b32.xlu0 (!%p272_p2), %v716_v1, %s779_s11  ;;  %592 = vperm.xlu1 (!%p272_p2), %757, %v589_v3  }
   0xd   : > { %s876_s28 = smov (!%p319_p3, %s706_s28), 3 }
   0xe   : > { %s707_s8 = sshll.u32 %s876_s28, 2  ;;  %s715_s27 = sshll.u32 %s876_s28, 3 }
   0xf   : > { %s328_s14 = scalar_lea.vmem %s871_s4, %s707_s8  ;;  %s334_s17 = scalar_lea.vmem %s872_s5, %s707_s8 }
  0x10   : > { %v351_v4 = vld [vmem:[%s328_s14] sm:$0xff]  ;;  %s322_s20 = scalar_lea.vmem %s870_s3, %s707_s8  ;;  %s340_s23 = scalar_lea.vmem %s873_s6, %s707_s8  ;;  %600 = vperm.xlu0 %758, %v597_v18  }
  0x11   : > { %v469_v5 = vld [vmem:[%s334_s17] sm:$0xff]  ;;  %v718_v6 = vcombine.high %v351_v4, %v351_v4  ;;  %v717_v7 = vcombine.low %v351_v4, %v351_v4  ;;  %s346_s8 = scalar_lea.vmem %s874_s7, %s715_s27 }
  0x12   : > { %v726_v8 = vcombine.high %v469_v5, %v469_v5  ;;  %v725_v9 = vcombine.low %v469_v5, %v469_v5  ;;  %v350_v10 = vld [vmem:[%s322_s20] sm:$0xff] }
  0x13   : > { %v529_v11 = vld [vmem:[%s340_s23] sm:$0xff]  ;;  %v722_v12 = vcombine.high %v350_v10, %v350_v10  ;;  %v721_v14 = vcombine.low %v350_v10, %v350_v10  ;;  %719 = vmatprep.subr.msk.bf16.mxu1 %vm366_vm0, %v718_v6  ;;  %v368_v16 = vsel %vm366_vm0, %v717_v7, 0 }
  0x14   : > { %v730_v13 = vcombine.high %v529_v11, %v529_v11  ;;  %v729_v15 = vcombine.low %v529_v11, %v529_v11  ;;  %727 = vmatprep.subr.msk.bf16.mxu0 %vm366_vm0, %v726_v8  ;;  %v481_v17 = vsel %vm366_vm0, %v725_v9, 0  ;;  %374 = vmatpush1.bf16.msra.mxu1 %v368_v16 }
  0x15   : > { %487 = vmatpush1.bf16.msra.mxu0 %v481_v17  ;;  %v423_v19 = vsel %vm366_vm0, %v721_v14, 0  ;;  %723 = vmatprep.subr.msk.bf16.mxu1 %vm366_vm0, %v722_v12 }
  0x16   : > { %v541_v20 = vsel %vm366_vm0, %v729_v15, 0  ;;  %731 = vmatprep.subr.msk.bf16.mxu0 %vm366_vm0, %v730_v13 }
  0x7a   : > { %v356_v21 = vpop.permute.xlu0 %355  ;;  %v531_v23 = vpop.permute.xlu1 %530 }
  0x7b   : > { %720 = vmatmul.mubr.msk.bf16.vlgmr.msra.gmra.mrb[0].mxu1 %vm362_vm1, %v356_v21 }
  0x7c   : > { %429 = vmatpush1.bf16.msra.mxu1 %v423_v19  ;;  %460 = vmatprep.mubr.bf16.mxu1 %v776_v2 }
  0x7e   : > { %v471_v22 = vpop.permute.xlu0 %470 }
  0x7f   : > { %728 = vmatmul.mubr.msk.bf16.vlgmr.msra.gmra.mrb[0].mxu0 %vm362_vm1, %v471_v22 }
  0x80   : > { %547 = vmatpush1.bf16.msra.mxu0 %v541_v20  ;;  %578 = vmatprep.mubr.bf16.mxu0 %v776_v2 }
  0x87   : > { %724 = vmatmul.mubr.msk.bf16.vlgmr.msra.gmra.mrb[0].mxu1 %vm362_vm1, %v349_v0 }
  0x8b   : > { %732 = vmatmul.mubr.msk.bf16.vlgmr.msra.gmra.mrb[0].mxu0 %vm362_vm1, %v531_v23  ;;  %v593_v29 = vpop.permute.xlu1 %592 }
  0x8f   : > { %v601_v34 = vpop.permute.xlu0 %600 }
 0x15a   : > { %v462_v24 = vpop.f32.mrb[0].mxu1 }
 0x15b   : > { %v464_v25 = vpop.f32.mrb[1].mxu1 }
 0x15c   : > { %v466_v26 = vpop.f32.mrb[2].mxu1 }
 0x15d   : > { %v467_v27 = vpop.f32.mrb[3].mxu1 }
 0x15e   : > { %v580_v28 = vpop.f32.mrb[0].mxu0 }
 0x15f   : > { %v735_v30 = vadd.f32 %v580_v28, %v462_v24  ;;  %v582_v31 = vpop.f32.mrb[1].mxu0 }
 0x160   : > { %v736_v32 = vadd.f32 %v582_v31, %v464_v25  ;;  %v584_v33 = vpop.f32.mrb[2].mxu0 }
 0x161   : > { %v595_v35 = vmul.f32 %v735_v30, %v593_v29  ;;  %v585_v36 = vpop.f32.mrb[3].mxu0 }
 0x162   : > { %v596_v37 = vmul.f32 %v736_v32, %v593_v29 }
 0x163   : > { %v603_v38 = vadd.f32 %v601_v34, %v595_v35 }
 0x164   : > { %v604_v39 = vadd.f32 %v601_v34, %v596_v37 }
 0x165   : > { %v605_v40 = vmax.f32 %v603_v38, 0.0 }
 0x166   : > { %v606_v41 = vmax.f32 %v604_v39, 0.0 }
 0x167   : > { %607 = vst [vmem:[%s346_s8] sm:$0xff] %v605_v40 }
 0x168   : > { %608 = vst [vmem:[%s346_s8 + $0x8] sm:$0xff] %v606_v41 }
 0x169 PF: > { %s17_s24 = sadd.s32 1, %s774_s24  }
 0x16a   : > { %p14_p4 = scmp.ge.s32.totalorder %s17_s24, 4  }
 0x16c   :  { %16 = sbr.rel (!%p14_p4) target bundleno = 1 (0x1), region = 87 }

</bundles_post_ra>
